<compile_context>
chip_gen: v7x
topology: tpu7x:2x2x1
jax: 0.10.0
libtpu: 0.0.40
codegen_flags: <defaults>
</compile_context>

<pallas_src>
import math

import numpy as np
import jax
import jax.numpy as jnp
from jax.experimental import pallas as pl

# ----------------------------- model dimensions ------------------------------
B = 2            # batch
S = 8            # max_sequence_length
D = 32           # embedding_dim
NUM_HEADS = 4
HEAD_DIM = D // NUM_HEADS
FFN = 64         # transformer feed-forward width
NUM_LAYERS = 2   # encoder layers
VOCAB = 8        # tokenizer vocabulary size
REG_H = 32       # regressor hidden width
LN_EPS = 1e-5
LANES = 128      # lane width of the packed slabs

# --------------------------- slab row layout (static) -------------------------
# bf16 weight slab: per layer [wqkv(D rows) | wo(D) | w1(D) | w2(FFN)], then regressor.
L_STRIDE_W = 3 * D + FFN                     # 160 rows per layer
R_WQKV, R_WO, R_W1, R_W2 = 0, D, 2 * D, 3 * D
R_RW1 = NUM_LAYERS * L_STRIDE_W              # 320
R_RW2 = R_RW1 + D                            # 352
W_ROWS = R_RW2 + REG_H                       # 384

# f32 vector slab: per layer 8 rows [bqkv, bo, g1, be1, b1, b2, g2, be2], then reg biases,
# then sqrt(D)-scaled embedding table, then positional encoding tiled to [B*S, D].
L_STRIDE_V = 8
R_RB1 = NUM_LAYERS * L_STRIDE_V              # 16
R_RB2 = R_RB1 + 1                            # 17
R_EMB = 24                                   # tile-aligned
R_PE = 32                                    # tile-aligned
V_ROWS = R_PE + B * S                        # 48


# ------------------------------ in-kernel helpers -----------------------------
def _mm(a, b):
    """2-D MXU matmul: bf16 inputs, f32 accumulation."""
    return jnp.dot(a.astype(jnp.bfloat16), b.astype(jnp.bfloat16),
                   preferred_element_type=jnp.float32)


def _mm_t(a, b):
    """a @ b.T (contract last dims), bf16 inputs, f32 accumulation."""
    return jax.lax.dot_general(a.astype(jnp.bfloat16), b.astype(jnp.bfloat16),
                               dimension_numbers=(((1,), (1,)), ((), ())),
                               preferred_element_type=jnp.float32)


def _layernorm(x, gamma, beta):
    mu = jnp.mean(x, axis=-1, keepdims=True)
    var = jnp.mean((x - mu) ** 2, axis=-1, keepdims=True)
    return (x - mu) * jax.lax.rsqrt(var + LN_EPS) * gamma + beta


# ------------------------------ fused kernel body -----------------------------
def joint_model_kernel(tok_ref, w_ref, v_ref, o_ref):
    """Whole JointModel forward for the full batch in a single invocation.

    tok_ref : [B*S, 1] int32 token ids
    w_ref   : [W_ROWS, 128] bf16 packed matmul weights
    v_ref   : [V_ROWS, 128] f32 packed biases / LN params / embedding / pos-enc
    o_ref   : [B, 1]   f32 regression output
    """
    tok = tok_ref[...]                                            # [B*S, 1] int32
    tok_b = jnp.broadcast_to(tok, (B * S, D))                     # hoisted broadcast

    emb = v_ref[R_EMB:R_EMB + VOCAB, 0:D]                         # [VOCAB, D] (sqrt(D) folded)
    pe = v_ref[R_PE:R_PE + B * S, 0:D]                            # [B*S, D]

    # ---- token embedding lookup on the VPU (VOCAB=8 compare+selects) + positional enc
    x = jnp.zeros((B * S, D), jnp.float32)
    for t in range(VOCAB):
        row = jnp.broadcast_to(emb[t:t + 1, :], (B * S, D))
        x = jnp.where(tok_b == t, row, x)
    x = x + pe                                                    # [B*S, D] f32

    scale = 1.0 / math.sqrt(HEAD_DIM)

    for layer in range(NUM_LAYERS):
        wbase = layer * L_STRIDE_W
        vbase = layer * L_STRIDE_V

        wqkv = w_ref[wbase + R_WQKV: wbase + R_WQKV + D, 0:3 * D]   # [D, 3D] bf16
        wo = w_ref[wbase + R_WO: wbase + R_WO + D, 0:D]             # [D, D]  bf16
        w1 = w_ref[wbase + R_W1: wbase + R_W1 + D, 0:FFN]           # [D, FFN]
        w2 = w_ref[wbase + R_W2: wbase + R_W2 + FFN, 0:D]           # [FFN, D]

        bqkv = v_ref[vbase + 0: vbase + 1, 0:3 * D]                 # [1, 3D] f32
        bo = v_ref[vbase + 1: vbase + 2, 0:D]
        g1 = v_ref[vbase + 2: vbase + 3, 0:D]
        be1 = v_ref[vbase + 3: vbase + 4, 0:D]
        b1 = v_ref[vbase + 4: vbase + 5, 0:FFN]
        b2 = v_ref[vbase + 5: vbase + 6, 0:D]
        g2 = v_ref[vbase + 6: vbase + 7, 0:D]
        be2 = v_ref[vbase + 7: vbase + 8, 0:D]

        # ---- fused QKV projection over the whole batch: [B*S, D] x [D, 3D]
        qkv = _mm(x, wqkv) + bqkv                                   # [B*S, 3D] f32

        # ---- scores / softmax / P.V per (batch, head); heads are 8-lane slices
        ctx_rows = []
        for b in range(B):
            r0 = b * S
            head_outs = []
            for h in range(NUM_HEADS):
                c = h * HEAD_DIM
                qh = qkv[r0:r0 + S, c:c + HEAD_DIM]                 # [S, HD]
                kh = qkv[r0:r0 + S, D + c:D + c + HEAD_DIM]
                vh = qkv[r0:r0 + S, 2 * D + c:2 * D + c + HEAD_DIM]
                s = _mm_t(qh, kh) * scale                           # [S, S] f32
                s = s - jnp.max(s, axis=-1, keepdims=True)
                p = jnp.exp(s)                                      # f32 softmax math
                denom = jnp.sum(p, axis=-1, keepdims=True)          # [S, 1]
                oh = _mm(p, vh) / denom                             # exact divide (f32)
                head_outs.append(oh)                                # [S, HD]
            ctx_rows.append(jnp.concatenate(head_outs, axis=-1))    # [S, D]
        ctx = jnp.concatenate(ctx_rows, axis=0)                     # [B*S, D]

        # ---- fused output projection: [B*S, D] x [D, D]
        attn = _mm(ctx, wo) + bo

        # ---- residual + LayerNorm 1 (post-norm, f32)
        h1 = _layernorm(x + attn, g1, be1)

        # ---- feed-forward
        f = jnp.maximum(_mm(h1, w1) + b1, 0.0)
        f = _mm(f, w2) + b2

        # ---- residual + LayerNorm 2 (f32)
        x = _layernorm(h1 + f, g2, be2)

    # ---- regressor on the CLS token (rows 0, S, 2S, ...)
    rw1 = w_ref[R_RW1:R_RW1 + D, 0:REG_H]                           # [D, REG_H] bf16
    rw2 = w_ref[R_RW2:R_RW2 + REG_H, 0:1]                           # [REG_H, 1] bf16
    rb1 = v_ref[R_RB1:R_RB1 + 1, 0:REG_H]                           # [1, REG_H] f32
    rb2 = v_ref[R_RB2:R_RB2 + 1, 0:1]                               # [1, 1]

    cls = jnp.concatenate([x[b * S:b * S + 1, :] for b in range(B)], axis=0)   # [B, D]
    hreg = jnp.maximum(_mm(cls, rw1) + rb1, 0.0)
    o_ref[...] = _mm(hreg, rw2) + rb2                               # [B, 1]


# ------------------------------ Pallas wrapper --------------------------------
@jax.jit
def joint_model_forward(tokens, w_slab, v_slab):
    """tokens: [B, S] int32 -> [B, 1] float32. Single fused pallas_call, no grid."""
    return pl.pallas_call(
        joint_model_kernel,
        out_shape=jax.ShapeDtypeStruct((B, 1), jnp.float32),
        # gridless: every operand is a whole-array VMEM block; 3 operands total.
    )(tokens.reshape(B * S, 1), w_slab, v_slab)


# ------------------------------ parameter setup -------------------------------
def init_params(key):
    keys = iter(jax.random.split(key, 48))

    def dense(shape, scale=0.02):
        return (scale * jax.random.normal(next(keys), shape)).astype(jnp.float32)

    tok_emb = dense((VOCAB, D), scale=0.1)

    enc_layers = []
    for _ in range(NUM_LAYERS):
        layer = (
            dense((D, D)), dense((D, D)), dense((D, D)),                       # wq wk wv (x @ W)
            dense((D,)), dense((D,)), dense((D,)),                             # bq bk bv
            dense((D, D)), dense((D,)),                                        # wo, bo
            1.0 + dense((D,), 0.1), dense((D,), 0.1),                          # LN1 gamma, beta
            dense((D, FFN)), dense((FFN,)),                                    # w1, b1
            dense((FFN, D)), dense((D,)),                                      # w2, b2
            1.0 + dense((D,), 0.1), dense((D,), 0.1),                          # LN2 gamma, beta
        )
        enc_layers.append(layer)

    reg_params = (dense((D, REG_H)), dense((REG_H,)),
                  dense((REG_H, 1)), dense((1,)))
    return tok_emb, enc_layers, reg_params


def sinusoidal_pe_np():
    pos = np.arange(S, dtype=np.float32)[:, None]
    div = np.exp(np.arange(0, D, 2, dtype=np.float32) * (-math.log(10000.0) / D))
    pe = np.zeros((S, D), np.float32)
    pe[:, 0::2] = np.sin(pos * div)
    pe[:, 1::2] = np.cos(pos * div)
    return pe


def pack_params(tok_emb, pe_np, enc_layers, reg_params):
    """Pack every parameter into two lane-dense slabs (bf16 weights, f32 vectors)."""
    w = np.zeros((W_ROWS, LANES), np.float32)
    v = np.zeros((V_ROWS, LANES), np.float32)

    for li, lp in enumerate(enc_layers):
        (wq, wk, wv, bq, bk, bv, wo, bo,
         g1, be1, w1, b1, w2, b2, g2, be2) = lp
        wb = li * L_STRIDE_W
        vb = li * L_STRIDE_V
        w[wb + R_WQKV: wb + R_WQKV + D, 0:D] = np.asarray(wq)
        w[wb + R_WQKV: wb + R_WQKV + D, D:2 * D] = np.asarray(wk)
        w[wb + R_WQKV: wb + R_WQKV + D, 2 * D:3 * D] = np.asarray(wv)
        w[wb + R_WO: wb + R_WO + D, 0:D] = np.asarray(wo)
        w[wb + R_W1: wb + R_W1 + D, 0:FFN] = np.asarray(w1)
        w[wb + R_W2: wb + R_W2 + FFN, 0:D] = np.asarray(w2)
        v[vb + 0, 0:D] = np.asarray(bq)
        v[vb + 0, D:2 * D] = np.asarray(bk)
        v[vb + 0, 2 * D:3 * D] = np.asarray(bv)
        v[vb + 1, 0:D] = np.asarray(bo)
        v[vb + 2, 0:D] = np.asarray(g1)
        v[vb + 3, 0:D] = np.asarray(be1)
        v[vb + 4, 0:FFN] = np.asarray(b1)
        v[vb + 5, 0:D] = np.asarray(b2)
        v[vb + 6, 0:D] = np.asarray(g2)
        v[vb + 7, 0:D] = np.asarray(be2)

    rw1, rb1, rw2, rb2 = reg_params
    w[R_RW1:R_RW1 + D, 0:REG_H] = np.asarray(rw1)
    w[R_RW2:R_RW2 + REG_H, 0:1] = np.asarray(rw2)
    v[R_RB1, 0:REG_H] = np.asarray(rb1)
    v[R_RB2, 0:1] = np.asarray(rb2)

    v[R_EMB:R_EMB + VOCAB, 0:D] = np.asarray(tok_emb) * math.sqrt(D)   # sqrt(D) pre-folded
    v[R_PE:R_PE + B * S, 0:D] = np.tile(pe_np, (B, 1))                  # pre-tiled pos-enc

    return jnp.asarray(w, dtype=jnp.bfloat16), jnp.asarray(v, dtype=jnp.float32)


# ------------------------------ pure-JAX reference -----------------------------
def _ln_ref(x, g, b):
    mu = jnp.mean(x, axis=-1, keepdims=True)
    var = jnp.mean((x - mu) ** 2, axis=-1, keepdims=True)
    return (x - mu) * jax.lax.rsqrt(var + LN_EPS) * g + b


def ref_forward(tokens, tok_emb, pe, enc_layers, reg_params):
    x = tok_emb[tokens.reshape(-1)] * math.sqrt(D) + jnp.tile(pe, (B, 1))
    scale = 1.0 / math.sqrt(HEAD_DIM)
    for (wq, wk, wv, bq, bk, bv, wo, bo, g1, be1, w1, b1, w2, b2, g2, be2) in enc_layers:
        q, k, v = x @ wq + bq, x @ wk + bk, x @ wv + bv
        ctx_rows = []
        for b in range(B):
            r = slice(b * S, (b + 1) * S)
            heads = []
            for h in range(NUM_HEADS):
                c = slice(h * HEAD_DIM, (h + 1) * HEAD_DIM)
                s = (q[r, c] @ k[r, c].T) * scale
                p = jax.nn.softmax(s, axis=-1)
                heads.append(p @ v[r, c])
            ctx_rows.append(jnp.concatenate(heads, axis=-1))
        ctx = jnp.concatenate(ctx_rows, axis=0)
        attn = ctx @ wo + bo
        h1 = _ln_ref(x + attn, g1, be1)
        f = jnp.maximum(h1 @ w1 + b1, 0.0) @ w2 + b2
        x = _ln_ref(h1 + f, g2, be2)
    cls = x.reshape(B, S, D)[:, 0, :]
    rw1, rb1, rw2, rb2 = reg_params
    h = jnp.maximum(cls @ rw1 + rb1, 0.0)
    return h @ rw2 + rb2


# ----------------------------------- main --------------------------------------
if __name__ == "__main__":
    key = jax.random.PRNGKey(0)
    k_tok, k_par = jax.random.split(key)

    tokens = jax.random.randint(k_tok, (B, S), 0, VOCAB, dtype=jnp.int32)
    tok_emb, enc_layers, reg_params = init_params(k_par)
    pe_np = sinusoidal_pe_np()
    w_slab, v_slab = pack_params(tok_emb, pe_np, enc_layers, reg_params)

    out = joint_model_forward(tokens, w_slab, v_slab)
    out = jax.block_until_ready(out)

    assert out.shape == (B, 1) and out.dtype == jnp.float32
    assert bool(jnp.all(jnp.isfinite(out)))

    # numerics sanity check vs f32 reference (kernel uses bf16 matmuls -> loose atol)
    ref = ref_forward(tokens, tok_emb, jnp.asarray(pe_np), enc_layers, reg_params)
    np.testing.assert_allclose(np.asarray(out), np.asarray(ref), rtol=0.0, atol=2e-2)

    print("KERNEL_OK")
</pallas_src>

<mosaic_0001>
module attributes {stable_mosaic.version = 11 : i64} {
  func.func @joint_model_kernel(%arg0: memref<16x1xi32, #tpu.memory_space<vmem>>, %arg1: memref<384x128xbf16, #tpu.memory_space<vmem>>, %arg2: memref<48x128xf32, #tpu.memory_space<vmem>>, %arg3: memref<2x1xf32, #tpu.memory_space<vmem>>) attributes {dimension_semantics = [], scalar_prefetch = 0 : i64, scratch_operands = 0 : i64, tpu.core_type = #tpu.core_type<tc>} {
    %c0 = arith.constant 0 : index
    %c0_0 = arith.constant 0 : index
    %0 = vector.load %arg0[%c0, %c0_0] : memref<16x1xi32, #tpu.memory_space<vmem>>, vector<16x1xi32>
    %1 = vector.shape_cast %0 : vector<16x1xi32> to vector<16x1xi32>
    %2 = vector.broadcast %1 : vector<16x1xi32> to vector<16x32xi32>
    %c24 = arith.constant 24 : index
    %c0_1 = arith.constant 0 : index
    %3 = vector.load %arg2[%c24, %c0_1] : memref<48x128xf32, #tpu.memory_space<vmem>>, vector<8x32xf32>
    %c32 = arith.constant 32 : index
    %c0_2 = arith.constant 0 : index
    %4 = vector.load %arg2[%c32, %c0_2] : memref<48x128xf32, #tpu.memory_space<vmem>>, vector<16x32xf32>
    %cst = arith.constant 0.000000e+00 : f32
    %5 = vector.broadcast %cst : f32 to vector<16x32xf32>
    %6 = vector.extract_strided_slice %3 {offsets = [0, 0], sizes = [1, 32], strides = [1, 1]} : vector<8x32xf32> to vector<1x32xf32>
    %7 = vector.shape_cast %6 : vector<1x32xf32> to vector<1x32xf32>
    %8 = vector.broadcast %7 : vector<1x32xf32> to vector<16x32xf32>
    %c0_i32 = arith.constant 0 : i32
    %9 = vector.broadcast %c0_i32 : i32 to vector<16x32xi32>
    %10 = arith.cmpi eq, %2, %9 : vector<16x32xi32>
    %11 = arith.select %10, %8, %5 : vector<16x32xi1>, vector<16x32xf32>
    %12 = vector.extract_strided_slice %3 {offsets = [1, 0], sizes = [1, 32], strides = [1, 1]} : vector<8x32xf32> to vector<1x32xf32>
    %13 = vector.shape_cast %12 : vector<1x32xf32> to vector<1x32xf32>
    %14 = vector.broadcast %13 : vector<1x32xf32> to vector<16x32xf32>
    %c1_i32 = arith.constant 1 : i32
    %15 = vector.broadcast %c1_i32 : i32 to vector<16x32xi32>
    %16 = arith.cmpi eq, %2, %15 : vector<16x32xi32>
    %17 = arith.select %16, %14, %11 : vector<16x32xi1>, vector<16x32xf32>
    %18 = vector.extract_strided_slice %3 {offsets = [2, 0], sizes = [1, 32], strides = [1, 1]} : vector<8x32xf32> to vector<1x32xf32>
    %19 = vector.shape_cast %18 : vector<1x32xf32> to vector<1x32xf32>
    %20 = vector.broadcast %19 : vector<1x32xf32> to vector<16x32xf32>
    %c2_i32 = arith.constant 2 : i32
    %21 = vector.broadcast %c2_i32 : i32 to vector<16x32xi32>
    %22 = arith.cmpi eq, %2, %21 : vector<16x32xi32>
    %23 = arith.select %22, %20, %17 : vector<16x32xi1>, vector<16x32xf32>
    %24 = vector.extract_strided_slice %3 {offsets = [3, 0], sizes = [1, 32], strides = [1, 1]} : vector<8x32xf32> to vector<1x32xf32>
    %25 = vector.shape_cast %24 : vector<1x32xf32> to vector<1x32xf32>
    %26 = vector.broadcast %25 : vector<1x32xf32> to vector<16x32xf32>
    %c3_i32 = arith.constant 3 : i32
    %27 = vector.broadcast %c3_i32 : i32 to vector<16x32xi32>
    %28 = arith.cmpi eq, %2, %27 : vector<16x32xi32>
    %29 = arith.select %28, %26, %23 : vector<16x32xi1>, vector<16x32xf32>
    %30 = vector.extract_strided_slice %3 {offsets = [4, 0], sizes = [1, 32], strides = [1, 1]} : vector<8x32xf32> to vector<1x32xf32>
    %31 = vector.shape_cast %30 : vector<1x32xf32> to vector<1x32xf32>
    %32 = vector.broadcast %31 : vector<1x32xf32> to vector<16x32xf32>
    %c4_i32 = arith.constant 4 : i32
    %33 = vector.broadcast %c4_i32 : i32 to vector<16x32xi32>
    %34 = arith.cmpi eq, %2, %33 : vector<16x32xi32>
    %35 = arith.select %34, %32, %29 : vector<16x32xi1>, vector<16x32xf32>
    %36 = vector.extract_strided_slice %3 {offsets = [5, 0], sizes = [1, 32], strides = [1, 1]} : vector<8x32xf32> to vector<1x32xf32>
    %37 = vector.shape_cast %36 : vector<1x32xf32> to vector<1x32xf32>
    %38 = vector.broadcast %37 : vector<1x32xf32> to vector<16x32xf32>
    %c5_i32 = arith.constant 5 : i32
    %39 = vector.broadcast %c5_i32 : i32 to vector<16x32xi32>
    %40 = arith.cmpi eq, %2, %39 : vector<16x32xi32>
    %41 = arith.select %40, %38, %35 : vector<16x32xi1>, vector<16x32xf32>
    %42 = vector.extract_strided_slice %3 {offsets = [6, 0], sizes = [1, 32], strides = [1, 1]} : vector<8x32xf32> to vector<1x32xf32>
    %43 = vector.shape_cast %42 : vector<1x32xf32> to vector<1x32xf32>
    %44 = vector.broadcast %43 : vector<1x32xf32> to vector<16x32xf32>
    %c6_i32 = arith.constant 6 : i32
    %45 = vector.broadcast %c6_i32 : i32 to vector<16x32xi32>
    %46 = arith.cmpi eq, %2, %45 : vector<16x32xi32>
    %47 = arith.select %46, %44, %41 : vector<16x32xi1>, vector<16x32xf32>
    %48 = vector.extract_strided_slice %3 {offsets = [7, 0], sizes = [1, 32], strides = [1, 1]} : vector<8x32xf32> to vector<1x32xf32>
    %49 = vector.shape_cast %48 : vector<1x32xf32> to vector<1x32xf32>
    %50 = vector.broadcast %49 : vector<1x32xf32> to vector<16x32xf32>
    %c7_i32 = arith.constant 7 : i32
    %51 = vector.broadcast %c7_i32 : i32 to vector<16x32xi32>
    %52 = arith.cmpi eq, %2, %51 : vector<16x32xi32>
    %53 = arith.select %52, %50, %47 : vector<16x32xi1>, vector<16x32xf32>
    %54 = arith.addf %53, %4 : vector<16x32xf32>
    %c0_3 = arith.constant 0 : index
    %c0_4 = arith.constant 0 : index
    %55 = vector.load %arg1[%c0_3, %c0_4] : memref<384x128xbf16, #tpu.memory_space<vmem>>, vector<32x96xbf16>
    %c32_5 = arith.constant 32 : index
    %c0_6 = arith.constant 0 : index
    %56 = vector.load %arg1[%c32_5, %c0_6] : memref<384x128xbf16, #tpu.memory_space<vmem>>, vector<32x32xbf16>
    %c64 = arith.constant 64 : index
    %c0_7 = arith.constant 0 : index
    %57 = vector.load %arg1[%c64, %c0_7] : memref<384x128xbf16, #tpu.memory_space<vmem>>, vector<32x64xbf16>
    %c96 = arith.constant 96 : index
    %c0_8 = arith.constant 0 : index
    %58 = vector.load %arg1[%c96, %c0_8] : memref<384x128xbf16, #tpu.memory_space<vmem>>, vector<64x32xbf16>
    %c0_9 = arith.constant 0 : index
    %c0_10 = arith.constant 0 : index
    %59 = vector.load %arg2[%c0_9, %c0_10] : memref<48x128xf32, #tpu.memory_space<vmem>>, vector<1x96xf32>
    %c1 = arith.constant 1 : index
    %c0_11 = arith.constant 0 : index
    %60 = vector.load %arg2[%c1, %c0_11] : memref<48x128xf32, #tpu.memory_space<vmem>>, vector<1x32xf32>
    %c2 = arith.constant 2 : index
    %c0_12 = arith.constant 0 : index
    %61 = vector.load %arg2[%c2, %c0_12] : memref<48x128xf32, #tpu.memory_space<vmem>>, vector<1x32xf32>
    %c3 = arith.constant 3 : index
    %c0_13 = arith.constant 0 : index
    %62 = vector.load %arg2[%c3, %c0_13] : memref<48x128xf32, #tpu.memory_space<vmem>>, vector<1x32xf32>
    %c4 = arith.constant 4 : index
    %c0_14 = arith.constant 0 : index
    %63 = vector.load %arg2[%c4, %c0_14] : memref<48x128xf32, #tpu.memory_space<vmem>>, vector<1x64xf32>
    %c5 = arith.constant 5 : index
    %c0_15 = arith.constant 0 : index
    %64 = vector.load %arg2[%c5, %c0_15] : memref<48x128xf32, #tpu.memory_space<vmem>>, vector<1x32xf32>
    %c6 = arith.constant 6 : index
    %c0_16 = arith.constant 0 : index
    %65 = vector.load %arg2[%c6, %c0_16] : memref<48x128xf32, #tpu.memory_space<vmem>>, vector<1x32xf32>
    %c7 = arith.constant 7 : index
    %c0_17 = arith.constant 0 : index
    %66 = vector.load %arg2[%c7, %c0_17] : memref<48x128xf32, #tpu.memory_space<vmem>>, vector<1x32xf32>
    %67 = arith.truncf %54 : vector<16x32xf32> to vector<16x32xbf16>
    %cst_18 = arith.constant dense<0.000000e+00> : vector<16x96xf32>
    %68 = tpu.matmul %67, %55, %cst_18 {dimension_numbers = #tpu.dot_dimension_numbers<[1], [0], [0], [1], [0, 0, 1, 1], [], []>} : vector<16x32xbf16>, vector<32x96xbf16>, vector<16x96xf32> -> vector<16x96xf32>
    %69 = vector.broadcast %59 : vector<1x96xf32> to vector<16x96xf32>
    %70 = arith.addf %68, %69 : vector<16x96xf32>
    %71 = vector.extract_strided_slice %70 {offsets = [0, 0], sizes = [8, 8], strides = [1, 1]} : vector<16x96xf32> to vector<8x8xf32>
    %72 = vector.extract_strided_slice %70 {offsets = [0, 32], sizes = [8, 8], strides = [1, 1]} : vector<16x96xf32> to vector<8x8xf32>
    %73 = vector.extract_strided_slice %70 {offsets = [0, 64], sizes = [8, 8], strides = [1, 1]} : vector<16x96xf32> to vector<8x8xf32>
    %74 = arith.truncf %71 : vector<8x8xf32> to vector<8x8xbf16>
    %75 = arith.truncf %72 : vector<8x8xf32> to vector<8x8xbf16>
    %cst_19 = arith.constant dense<0.000000e+00> : vector<8x8xf32>
    %76 = tpu.matmul %74, %75, %cst_19 {dimension_numbers = #tpu.dot_dimension_numbers<[1], [1], [0], [0], [0, 0, 1, 0], [], []>} : vector<8x8xbf16>, vector<8x8xbf16>, vector<8x8xf32> -> vector<8x8xf32>
    %cst_20 = arith.constant 0.353553385 : f32
    %77 = vector.broadcast %cst_20 : f32 to vector<8x8xf32>
    %78 = arith.mulf %76, %77 : vector<8x8xf32>
    %cst_21 = arith.constant dense<0xFF800000> : vector<8xf32>
    %79 = vector.multi_reduction <maximumf>, %78, %cst_21 [1] : vector<8x8xf32> to vector<8xf32>
    %80 = vector.shape_cast %79 : vector<8xf32> to vector<8x1xf32>
    %81 = vector.broadcast %80 : vector<8x1xf32> to vector<8x8xf32>
    %82 = arith.subf %78, %81 : vector<8x8xf32>
    %83 = math.exp %82 : vector<8x8xf32>
    %cst_22 = arith.constant dense<0.000000e+00> : vector<8xf32>
    %84 = vector.multi_reduction <add>, %83, %cst_22 [1] : vector<8x8xf32> to vector<8xf32>
    %85 = vector.shape_cast %84 : vector<8xf32> to vector<8x1xf32>
    %86 = arith.truncf %83 : vector<8x8xf32> to vector<8x8xbf16>
    %87 = arith.truncf %73 : vector<8x8xf32> to vector<8x8xbf16>
    %cst_23 = arith.constant dense<0.000000e+00> : vector<8x8xf32>
    %88 = tpu.matmul %86, %87, %cst_23 {dimension_numbers = #tpu.dot_dimension_numbers<[1], [0], [0], [1], [0, 0, 1, 1], [], []>} : vector<8x8xbf16>, vector<8x8xbf16>, vector<8x8xf32> -> vector<8x8xf32>
    %89 = vector.broadcast %85 : vector<8x1xf32> to vector<8x8xf32>
    %90 = arith.divf %88, %89 : vector<8x8xf32>
    %91 = vector.extract_strided_slice %70 {offsets = [0, 8], sizes = [8, 8], strides = [1, 1]} : vector<16x96xf32> to vector<8x8xf32>
    %92 = vector.extract_strided_slice %70 {offsets = [0, 40], sizes = [8, 8], strides = [1, 1]} : vector<16x96xf32> to vector<8x8xf32>
    %93 = vector.extract_strided_slice %70 {offsets = [0, 72], sizes = [8, 8], strides = [1, 1]} : vector<16x96xf32> to vector<8x8xf32>
    %94 = arith.truncf %91 : vector<8x8xf32> to vector<8x8xbf16>
    %95 = arith.truncf %92 : vector<8x8xf32> to vector<8x8xbf16>
    %cst_24 = arith.constant dense<0.000000e+00> : vector<8x8xf32>
    %96 = tpu.matmul %94, %95, %cst_24 {dimension_numbers = #tpu.dot_dimension_numbers<[1], [1], [0], [0], [0, 0, 1, 0], [], []>} : vector<8x8xbf16>, vector<8x8xbf16>, vector<8x8xf32> -> vector<8x8xf32>
    %cst_25 = arith.constant 0.353553385 : f32
    %97 = vector.broadcast %cst_25 : f32 to vector<8x8xf32>
    %98 = arith.mulf %96, %97 : vector<8x8xf32>
    %cst_26 = arith.constant dense<0xFF800000> : vector<8xf32>
    %99 = vector.multi_reduction <maximumf>, %98, %cst_26 [1] : vector<8x8xf32> to vector<8xf32>
    %100 = vector.shape_cast %99 : vector<8xf32> to vector<8x1xf32>
    %101 = vector.broadcast %100 : vector<8x1xf32> to vector<8x8xf32>
    %102 = arith.subf %98, %101 : vector<8x8xf32>
    %103 = math.exp %102 : vector<8x8xf32>
    %cst_27 = arith.constant dense<0.000000e+00> : vector<8xf32>
    %104 = vector.multi_reduction <add>, %103, %cst_27 [1] : vector<8x8xf32> to vector<8xf32>
    %105 = vector.shape_cast %104 : vector<8xf32> to vector<8x1xf32>
    %106 = arith.truncf %103 : vector<8x8xf32> to vector<8x8xbf16>
    %107 = arith.truncf %93 : vector<8x8xf32> to vector<8x8xbf16>
    %cst_28 = arith.constant dense<0.000000e+00> : vector<8x8xf32>
    %108 = tpu.matmul %106, %107, %cst_28 {dimension_numbers = #tpu.dot_dimension_numbers<[1], [0], [0], [1], [0, 0, 1, 1], [], []>} : vector<8x8xbf16>, vector<8x8xbf16>, vector<8x8xf32> -> vector<8x8xf32>
    %109 = vector.broadcast %105 : vector<8x1xf32> to vector<8x8xf32>
    %110 = arith.divf %108, %109 : vector<8x8xf32>
    %111 = vector.extract_strided_slice %70 {offsets = [0, 16], sizes = [8, 8], strides = [1, 1]} : vector<16x96xf32> to vector<8x8xf32>
    %112 = vector.extract_strided_slice %70 {offsets = [0, 48], sizes = [8, 8], strides = [1, 1]} : vector<16x96xf32> to vector<8x8xf32>
    %113 = vector.extract_strided_slice %70 {offsets = [0, 80], sizes = [8, 8], strides = [1, 1]} : vector<16x96xf32> to vector<8x8xf32>
    %114 = arith.truncf %111 : vector<8x8xf32> to vector<8x8xbf16>
    %115 = arith.truncf %112 : vector<8x8xf32> to vector<8x8xbf16>
    %cst_29 = arith.constant dense<0.000000e+00> : vector<8x8xf32>
    %116 = tpu.matmul %114, %115, %cst_29 {dimension_numbers = #tpu.dot_dimension_numbers<[1], [1], [0], [0], [0, 0, 1, 0], [], []>} : vector<8x8xbf16>, vector<8x8xbf16>, vector<8x8xf32> -> vector<8x8xf32>
    %cst_30 = arith.constant 0.353553385 : f32
    %117 = vector.broadcast %cst_30 : f32 to vector<8x8xf32>
    %118 = arith.mulf %116, %117 : vector<8x8xf32>
    %cst_31 = arith.constant dense<0xFF800000> : vector<8xf32>
    %119 = vector.multi_reduction <maximumf>, %118, %cst_31 [1] : vector<8x8xf32> to vector<8xf32>
    %120 = vector.shape_cast %119 : vector<8xf32> to vector<8x1xf32>
    %121 = vector.broadcast %120 : vector<8x1xf32> to vector<8x8xf32>
    %122 = arith.subf %118, %121 : vector<8x8xf32>
    %123 = math.exp %122 : vector<8x8xf32>
    %cst_32 = arith.constant dense<0.000000e+00> : vector<8xf32>
    %124 = vector.multi_reduction <add>, %123, %cst_32 [1] : vector<8x8xf32> to vector<8xf32>
    %125 = vector.shape_cast %124 : vector<8xf32> to vector<8x1xf32>
    %126 = arith.truncf %123 : vector<8x8xf32> to vector<8x8xbf16>
    %127 = arith.truncf %113 : vector<8x8xf32> to vector<8x8xbf16>
    %cst_33 = arith.constant dense<0.000000e+00> : vector<8x8xf32>
    %128 = tpu.matmul %126, %127, %cst_33 {dimension_numbers = #tpu.dot_dimension_numbers<[1], [0], [0], [1], [0, 0, 1, 1], [], []>} : vector<8x8xbf16>, vector<8x8xbf16>, vector<8x8xf32> -> vector<8x8xf32>
    %129 = vector.broadcast %125 : vector<8x1xf32> to vector<8x8xf32>
    %130 = arith.divf %128, %129 : vector<8x8xf32>
    %131 = vector.extract_strided_slice %70 {offsets = [0, 24], sizes = [8, 8], strides = [1, 1]} : vector<16x96xf32> to vector<8x8xf32>
    %132 = vector.extract_strided_slice %70 {offsets = [0, 56], sizes = [8, 8], strides = [1, 1]} : vector<16x96xf32> to vector<8x8xf32>
    %133 = vector.extract_strided_slice %70 {offsets = [0, 88], sizes = [8, 8], strides = [1, 1]} : vector<16x96xf32> to vector<8x8xf32>
    %134 = arith.truncf %131 : vector<8x8xf32> to vector<8x8xbf16>
    %135 = arith.truncf %132 : vector<8x8xf32> to vector<8x8xbf16>
    %cst_34 = arith.constant dense<0.000000e+00> : vector<8x8xf32>
    %136 = tpu.matmul %134, %135, %cst_34 {dimension_numbers = #tpu.dot_dimension_numbers<[1], [1], [0], [0], [0, 0, 1, 0], [], []>} : vector<8x8xbf16>, vector<8x8xbf16>, vector<8x8xf32> -> vector<8x8xf32>
    %cst_35 = arith.constant 0.353553385 : f32
    %137 = vector.broadcast %cst_35 : f32 to vector<8x8xf32>
    %138 = arith.mulf %136, %137 : vector<8x8xf32>
    %cst_36 = arith.constant dense<0xFF800000> : vector<8xf32>
    %139 = vector.multi_reduction <maximumf>, %138, %cst_36 [1] : vector<8x8xf32> to vector<8xf32>
    %140 = vector.shape_cast %139 : vector<8xf32> to vector<8x1xf32>
    %141 = vector.broadcast %140 : vector<8x1xf32> to vector<8x8xf32>
    %142 = arith.subf %138, %141 : vector<8x8xf32>
    %143 = math.exp %142 : vector<8x8xf32>
    %cst_37 = arith.constant dense<0.000000e+00> : vector<8xf32>
    %144 = vector.multi_reduction <add>, %143, %cst_37 [1] : vector<8x8xf32> to vector<8xf32>
    %145 = vector.shape_cast %144 : vector<8xf32> to vector<8x1xf32>
    %146 = arith.truncf %143 : vector<8x8xf32> to vector<8x8xbf16>
    %147 = arith.truncf %133 : vector<8x8xf32> to vector<8x8xbf16>
    %cst_38 = arith.constant dense<0.000000e+00> : vector<8x8xf32>
    %148 = tpu.matmul %146, %147, %cst_38 {dimension_numbers = #tpu.dot_dimension_numbers<[1], [0], [0], [1], [0, 0, 1, 1], [], []>} : vector<8x8xbf16>, vector<8x8xbf16>, vector<8x8xf32> -> vector<8x8xf32>
    %149 = vector.broadcast %145 : vector<8x1xf32> to vector<8x8xf32>
    %150 = arith.divf %148, %149 : vector<8x8xf32>
    %151 = tpu.concatenate %90, %110, %130, %150 in 1 : vector<8x8xf32>, vector<8x8xf32>, vector<8x8xf32>, vector<8x8xf32> -> vector<8x32xf32>
    %152 = vector.extract_strided_slice %70 {offsets = [8, 0], sizes = [8, 8], strides = [1, 1]} : vector<16x96xf32> to vector<8x8xf32>
    %153 = vector.extract_strided_slice %70 {offsets = [8, 32], sizes = [8, 8], strides = [1, 1]} : vector<16x96xf32> to vector<8x8xf32>
    %154 = vector.extract_strided_slice %70 {offsets = [8, 64], sizes = [8, 8], strides = [1, 1]} : vector<16x96xf32> to vector<8x8xf32>
    %155 = arith.truncf %152 : vector<8x8xf32> to vector<8x8xbf16>
    %156 = arith.truncf %153 : vector<8x8xf32> to vector<8x8xbf16>
    %cst_39 = arith.constant dense<0.000000e+00> : vector<8x8xf32>
    %157 = tpu.matmul %155, %156, %cst_39 {dimension_numbers = #tpu.dot_dimension_numbers<[1], [1], [0], [0], [0, 0, 1, 0], [], []>} : vector<8x8xbf16>, vector<8x8xbf16>, vector<8x8xf32> -> vector<8x8xf32>
    %cst_40 = arith.constant 0.353553385 : f32
    %158 = vector.broadcast %cst_40 : f32 to vector<8x8xf32>
    %159 = arith.mulf %157, %158 : vector<8x8xf32>
    %cst_41 = arith.constant dense<0xFF800000> : vector<8xf32>
    %160 = vector.multi_reduction <maximumf>, %159, %cst_41 [1] : vector<8x8xf32> to vector<8xf32>
    %161 = vector.shape_cast %160 : vector<8xf32> to vector<8x1xf32>
    %162 = vector.broadcast %161 : vector<8x1xf32> to vector<8x8xf32>
    %163 = arith.subf %159, %162 : vector<8x8xf32>
    %164 = math.exp %163 : vector<8x8xf32>
    %cst_42 = arith.constant dense<0.000000e+00> : vector<8xf32>
    %165 = vector.multi_reduction <add>, %164, %cst_42 [1] : vector<8x8xf32> to vector<8xf32>
    %166 = vector.shape_cast %165 : vector<8xf32> to vector<8x1xf32>
    %167 = arith.truncf %164 : vector<8x8xf32> to vector<8x8xbf16>
    %168 = arith.truncf %154 : vector<8x8xf32> to vector<8x8xbf16>
    %cst_43 = arith.constant dense<0.000000e+00> : vector<8x8xf32>
    %169 = tpu.matmul %167, %168, %cst_43 {dimension_numbers = #tpu.dot_dimension_numbers<[1], [0], [0], [1], [0, 0, 1, 1], [], []>} : vector<8x8xbf16>, vector<8x8xbf16>, vector<8x8xf32> -> vector<8x8xf32>
    %170 = vector.broadcast %166 : vector<8x1xf32> to vector<8x8xf32>
    %171 = arith.divf %169, %170 : vector<8x8xf32>
    %172 = vector.extract_strided_slice %70 {offsets = [8, 8], sizes = [8, 8], strides = [1, 1]} : vector<16x96xf32> to vector<8x8xf32>
    %173 = vector.extract_strided_slice %70 {offsets = [8, 40], sizes = [8, 8], strides = [1, 1]} : vector<16x96xf32> to vector<8x8xf32>
    %174 = vector.extract_strided_slice %70 {offsets = [8, 72], sizes = [8, 8], strides = [1, 1]} : vector<16x96xf32> to vector<8x8xf32>
    %175 = arith.truncf %172 : vector<8x8xf32> to vector<8x8xbf16>
    %176 = arith.truncf %173 : vector<8x8xf32> to vector<8x8xbf16>
    %cst_44 = arith.constant dense<0.000000e+00> : vector<8x8xf32>
    %177 = tpu.matmul %175, %176, %cst_44 {dimension_numbers = #tpu.dot_dimension_numbers<[1], [1], [0], [0], [0, 0, 1, 0], [], []>} : vector<8x8xbf16>, vector<8x8xbf16>, vector<8x8xf32> -> vector<8x8xf32>
    %cst_45 = arith.constant 0.353553385 : f32
    %178 = vector.broadcast %cst_45 : f32 to vector<8x8xf32>
    %179 = arith.mulf %177, %178 : vector<8x8xf32>
    %cst_46 = arith.constant dense<0xFF800000> : vector<8xf32>
    %180 = vector.multi_reduction <maximumf>, %179, %cst_46 [1] : vector<8x8xf32> to vector<8xf32>
    %181 = vector.shape_cast %180 : vector<8xf32> to vector<8x1xf32>
    %182 = vector.broadcast %181 : vector<8x1xf32> to vector<8x8xf32>
    %183 = arith.subf %179, %182 : vector<8x8xf32>
    %184 = math.exp %183 : vector<8x8xf32>
    %cst_47 = arith.constant dense<0.000000e+00> : vector<8xf32>
    %185 = vector.multi_reduction <add>, %184, %cst_47 [1] : vector<8x8xf32> to vector<8xf32>
    %186 = vector.shape_cast %185 : vector<8xf32> to vector<8x1xf32>
    %187 = arith.truncf %184 : vector<8x8xf32> to vector<8x8xbf16>
    %188 = arith.truncf %174 : vector<8x8xf32> to vector<8x8xbf16>
    %cst_48 = arith.constant dense<0.000000e+00> : vector<8x8xf32>
    %189 = tpu.matmul %187, %188, %cst_48 {dimension_numbers = #tpu.dot_dimension_numbers<[1], [0], [0], [1], [0, 0, 1, 1], [], []>} : vector<8x8xbf16>, vector<8x8xbf16>, vector<8x8xf32> -> vector<8x8xf32>
    %190 = vector.broadcast %186 : vector<8x1xf32> to vector<8x8xf32>
    %191 = arith.divf %189, %190 : vector<8x8xf32>
    %192 = vector.extract_strided_slice %70 {offsets = [8, 16], sizes = [8, 8], strides = [1, 1]} : vector<16x96xf32> to vector<8x8xf32>
    %193 = vector.extract_strided_slice %70 {offsets = [8, 48], sizes = [8, 8], strides = [1, 1]} : vector<16x96xf32> to vector<8x8xf32>
    %194 = vector.extract_strided_slice %70 {offsets = [8, 80], sizes = [8, 8], strides = [1, 1]} : vector<16x96xf32> to vector<8x8xf32>
    %195 = arith.truncf %192 : vector<8x8xf32> to vector<8x8xbf16>
    %196 = arith.truncf %193 : vector<8x8xf32> to vector<8x8xbf16>
    %cst_49 = arith.constant dense<0.000000e+00> : vector<8x8xf32>
    %197 = tpu.matmul %195, %196, %cst_49 {dimension_numbers = #tpu.dot_dimension_numbers<[1], [1], [0], [0], [0, 0, 1, 0], [], []>} : vector<8x8xbf16>, vector<8x8xbf16>, vector<8x8xf32> -> vector<8x8xf32>
    %cst_50 = arith.constant 0.353553385 : f32
    %198 = vector.broadcast %cst_50 : f32 to vector<8x8xf32>
    %199 = arith.mulf %197, %198 : vector<8x8xf32>
    %cst_51 = arith.constant dense<0xFF800000> : vector<8xf32>
    %200 = vector.multi_reduction <maximumf>, %199, %cst_51 [1] : vector<8x8xf32> to vector<8xf32>
    %201 = vector.shape_cast %200 : vector<8xf32> to vector<8x1xf32>
    %202 = vector.broadcast %201 : vector<8x1xf32> to vector<8x8xf32>
    %203 = arith.subf %199, %202 : vector<8x8xf32>
    %204 = math.exp %203 : vector<8x8xf32>
    %cst_52 = arith.constant dense<0.000000e+00> : vector<8xf32>
    %205 = vector.multi_reduction <add>, %204, %cst_52 [1] : vector<8x8xf32> to vector<8xf32>
    %206 = vector.shape_cast %205 : vector<8xf32> to vector<8x1xf32>
    %207 = arith.truncf %204 : vector<8x8xf32> to vector<8x8xbf16>
    %208 = arith.truncf %194 : vector<8x8xf32> to vector<8x8xbf16>
    %cst_53 = arith.constant dense<0.000000e+00> : vector<8x8xf32>
    %209 = tpu.matmul %207, %208, %cst_53 {dimension_numbers = #tpu.dot_dimension_numbers<[1], [0], [0], [1], [0, 0, 1, 1], [], []>} : vector<8x8xbf16>, vector<8x8xbf16>, vector<8x8xf32> -> vector<8x8xf32>
    %210 = vector.broadcast %206 : vector<8x1xf32> to vector<8x8xf32>
    %211 = arith.divf %209, %210 : vector<8x8xf32>
    %212 = vector.extract_strided_slice %70 {offsets = [8, 24], sizes = [8, 8], strides = [1, 1]} : vector<16x96xf32> to vector<8x8xf32>
    %213 = vector.extract_strided_slice %70 {offsets = [8, 56], sizes = [8, 8], strides = [1, 1]} : vector<16x96xf32> to vector<8x8xf32>
    %214 = vector.extract_strided_slice %70 {offsets = [8, 88], sizes = [8, 8], strides = [1, 1]} : vector<16x96xf32> to vector<8x8xf32>
    %215 = arith.truncf %212 : vector<8x8xf32> to vector<8x8xbf16>
    %216 = arith.truncf %213 : vector<8x8xf32> to vector<8x8xbf16>
    %cst_54 = arith.constant dense<0.000000e+00> : vector<8x8xf32>
    %217 = tpu.matmul %215, %216, %cst_54 {dimension_numbers = #tpu.dot_dimension_numbers<[1], [1], [0], [0], [0, 0, 1, 0], [], []>} : vector<8x8xbf16>, vector<8x8xbf16>, vector<8x8xf32> -> vector<8x8xf32>
    %cst_55 = arith.constant 0.353553385 : f32
    %218 = vector.broadcast %cst_55 : f32 to vector<8x8xf32>
    %219 = arith.mulf %217, %218 : vector<8x8xf32>
    %cst_56 = arith.constant dense<0xFF800000> : vector<8xf32>
    %220 = vector.multi_reduction <maximumf>, %219, %cst_56 [1] : vector<8x8xf32> to vector<8xf32>
    %221 = vector.shape_cast %220 : vector<8xf32> to vector<8x1xf32>
    %222 = vector.broadcast %221 : vector<8x1xf32> to vector<8x8xf32>
    %223 = arith.subf %219, %222 : vector<8x8xf32>
    %224 = math.exp %223 : vector<8x8xf32>
    %cst_57 = arith.constant dense<0.000000e+00> : vector<8xf32>
    %225 = vector.multi_reduction <add>, %224, %cst_57 [1] : vector<8x8xf32> to vector<8xf32>
    %226 = vector.shape_cast %225 : vector<8xf32> to vector<8x1xf32>
    %227 = arith.truncf %224 : vector<8x8xf32> to vector<8x8xbf16>
    %228 = arith.truncf %214 : vector<8x8xf32> to vector<8x8xbf16>
    %cst_58 = arith.constant dense<0.000000e+00> : vector<8x8xf32>
    %229 = tpu.matmul %227, %228, %cst_58 {dimension_numbers = #tpu.dot_dimension_numbers<[1], [0], [0], [1], [0, 0, 1, 1], [], []>} : vector<8x8xbf16>, vector<8x8xbf16>, vector<8x8xf32> -> vector<8x8xf32>
    %230 = vector.broadcast %226 : vector<8x1xf32> to vector<8x8xf32>
    %231 = arith.divf %229, %230 : vector<8x8xf32>
    %232 = tpu.concatenate %171, %191, %211, %231 in 1 : vector<8x8xf32>, vector<8x8xf32>, vector<8x8xf32>, vector<8x8xf32> -> vector<8x32xf32>
    %233 = tpu.concatenate %151, %232 in 0 : vector<8x32xf32>, vector<8x32xf32> -> vector<16x32xf32>
    %234 = arith.truncf %233 : vector<16x32xf32> to vector<16x32xbf16>
    %cst_59 = arith.constant dense<0.000000e+00> : vector<16x32xf32>
    %235 = tpu.matmul %234, %56, %cst_59 {dimension_numbers = #tpu.dot_dimension_numbers<[1], [0], [0], [1], [0, 0, 1, 1], [], []>} : vector<16x32xbf16>, vector<32x32xbf16>, vector<16x32xf32> -> vector<16x32xf32>
    %236 = vector.broadcast %60 : vector<1x32xf32> to vector<16x32xf32>
    %237 = arith.addf %235, %236 : vector<16x32xf32>
    %238 = arith.addf %54, %237 : vector<16x32xf32>
    %cst_60 = arith.constant dense<0.000000e+00> : vector<16xf32>
    %239 = vector.multi_reduction <add>, %238, %cst_60 [1] : vector<16x32xf32> to vector<16xf32>
    %240 = vector.shape_cast %239 : vector<16xf32> to vector<16x1xf32>
    %cst_61 = arith.constant 3.200000e+01 : f32
    %241 = vector.broadcast %cst_61 : f32 to vector<16x1xf32>
    %242 = arith.divf %240, %241 : vector<16x1xf32>
    %243 = vector.broadcast %242 : vector<16x1xf32> to vector<16x32xf32>
    %244 = arith.subf %238, %243 : vector<16x32xf32>
    %245 = arith.mulf %244, %244 : vector<16x32xf32>
    %cst_62 = arith.constant dense<0.000000e+00> : vector<16xf32>
    %246 = vector.multi_reduction <add>, %245, %cst_62 [1] : vector<16x32xf32> to vector<16xf32>
    %247 = vector.shape_cast %246 : vector<16xf32> to vector<16x1xf32>
    %cst_63 = arith.constant 3.200000e+01 : f32
    %248 = vector.broadcast %cst_63 : f32 to vector<16x1xf32>
    %249 = arith.divf %247, %248 : vector<16x1xf32>
    %250 = vector.broadcast %242 : vector<16x1xf32> to vector<16x32xf32>
    %251 = arith.subf %238, %250 : vector<16x32xf32>
    %cst_64 = arith.constant 9.99999974E-6 : f32
    %252 = vector.broadcast %cst_64 : f32 to vector<16x1xf32>
    %253 = arith.addf %249, %252 : vector<16x1xf32>
    %254 = math.rsqrt %253 : vector<16x1xf32>
    %255 = vector.broadcast %254 : vector<16x1xf32> to vector<16x32xf32>
    %256 = arith.mulf %251, %255 : vector<16x32xf32>
    %257 = vector.broadcast %61 : vector<1x32xf32> to vector<16x32xf32>
    %258 = arith.mulf %256, %257 : vector<16x32xf32>
    %259 = vector.broadcast %62 : vector<1x32xf32> to vector<16x32xf32>
    %260 = arith.addf %258, %259 : vector<16x32xf32>
    %261 = arith.truncf %260 : vector<16x32xf32> to vector<16x32xbf16>
    %cst_65 = arith.constant dense<0.000000e+00> : vector<16x64xf32>
    %262 = tpu.matmul %261, %57, %cst_65 {dimension_numbers = #tpu.dot_dimension_numbers<[1], [0], [0], [1], [0, 0, 1, 1], [], []>} : vector<16x32xbf16>, vector<32x64xbf16>, vector<16x64xf32> -> vector<16x64xf32>
    %263 = vector.broadcast %63 : vector<1x64xf32> to vector<16x64xf32>
    %264 = arith.addf %262, %263 : vector<16x64xf32>
    %cst_66 = arith.constant 0.000000e+00 : f32
    %265 = vector.broadcast %cst_66 : f32 to vector<16x64xf32>
    %266 = arith.maximumf %264, %265 : vector<16x64xf32>
    %267 = arith.truncf %266 : vector<16x64xf32> to vector<16x64xbf16>
    %cst_67 = arith.constant dense<0.000000e+00> : vector<16x32xf32>
    %268 = tpu.matmul %267, %58, %cst_67 {dimension_numbers = #tpu.dot_dimension_numbers<[1], [0], [0], [1], [0, 0, 1, 1], [], []>} : vector<16x64xbf16>, vector<64x32xbf16>, vector<16x32xf32> -> vector<16x32xf32>
    %269 = vector.broadcast %64 : vector<1x32xf32> to vector<16x32xf32>
    %270 = arith.addf %268, %269 : vector<16x32xf32>
    %271 = arith.addf %260, %270 : vector<16x32xf32>
    %cst_68 = arith.constant dense<0.000000e+00> : vector<16xf32>
    %272 = vector.multi_reduction <add>, %271, %cst_68 [1] : vector<16x32xf32> to vector<16xf32>
    %273 = vector.shape_cast %272 : vector<16xf32> to vector<16x1xf32>
    %cst_69 = arith.constant 3.200000e+01 : f32
    %274 = vector.broadcast %cst_69 : f32 to vector<16x1xf32>
    %275 = arith.divf %273, %274 : vector<16x1xf32>
    %276 = vector.broadcast %275 : vector<16x1xf32> to vector<16x32xf32>
    %277 = arith.subf %271, %276 : vector<16x32xf32>
    %278 = arith.mulf %277, %277 : vector<16x32xf32>
    %cst_70 = arith.constant dense<0.000000e+00> : vector<16xf32>
    %279 = vector.multi_reduction <add>, %278, %cst_70 [1] : vector<16x32xf32> to vector<16xf32>
    %280 = vector.shape_cast %279 : vector<16xf32> to vector<16x1xf32>
    %cst_71 = arith.constant 3.200000e+01 : f32
    %281 = vector.broadcast %cst_71 : f32 to vector<16x1xf32>
    %282 = arith.divf %280, %281 : vector<16x1xf32>
    %283 = vector.broadcast %275 : vector<16x1xf32> to vector<16x32xf32>
    %284 = arith.subf %271, %283 : vector<16x32xf32>
    %cst_72 = arith.constant 9.99999974E-6 : f32
    %285 = vector.broadcast %cst_72 : f32 to vector<16x1xf32>
    %286 = arith.addf %282, %285 : vector<16x1xf32>
    %287 = math.rsqrt %286 : vector<16x1xf32>
    %288 = vector.broadcast %287 : vector<16x1xf32> to vector<16x32xf32>
    %289 = arith.mulf %284, %288 : vector<16x32xf32>
    %290 = vector.broadcast %65 : vector<1x32xf32> to vector<16x32xf32>
    %291 = arith.mulf %289, %290 : vector<16x32xf32>
    %292 = vector.broadcast %66 : vector<1x32xf32> to vector<16x32xf32>
    %293 = arith.addf %291, %292 : vector<16x32xf32>
    %c160 = arith.constant 160 : index
    %c0_73 = arith.constant 0 : index
    %294 = vector.load %arg1[%c160, %c0_73] : memref<384x128xbf16, #tpu.memory_space<vmem>>, vector<32x96xbf16>
    %c192 = arith.constant 192 : index
    %c0_74 = arith.constant 0 : index
    %295 = vector.load %arg1[%c192, %c0_74] : memref<384x128xbf16, #tpu.memory_space<vmem>>, vector<32x32xbf16>
    %c224 = arith.constant 224 : index
    %c0_75 = arith.constant 0 : index
    %296 = vector.load %arg1[%c224, %c0_75] : memref<384x128xbf16, #tpu.memory_space<vmem>>, vector<32x64xbf16>
    %c256 = arith.constant 256 : index
    %c0_76 = arith.constant 0 : index
    %297 = vector.load %arg1[%c256, %c0_76] : memref<384x128xbf16, #tpu.memory_space<vmem>>, vector<64x32xbf16>
    %c8 = arith.constant 8 : index
    %c0_77 = arith.constant 0 : index
    %298 = vector.load %arg2[%c8, %c0_77] : memref<48x128xf32, #tpu.memory_space<vmem>>, vector<1x96xf32>
    %c9 = arith.constant 9 : index
    %c0_78 = arith.constant 0 : index
    %299 = vector.load %arg2[%c9, %c0_78] : memref<48x128xf32, #tpu.memory_space<vmem>>, vector<1x32xf32>
    %c10 = arith.constant 10 : index
    %c0_79 = arith.constant 0 : index
    %300 = vector.load %arg2[%c10, %c0_79] : memref<48x128xf32, #tpu.memory_space<vmem>>, vector<1x32xf32>
    %c11 = arith.constant 11 : index
    %c0_80 = arith.constant 0 : index
    %301 = vector.load %arg2[%c11, %c0_80] : memref<48x128xf32, #tpu.memory_space<vmem>>, vector<1x32xf32>
    %c12 = arith.constant 12 : index
    %c0_81 = arith.constant 0 : index
    %302 = vector.load %arg2[%c12, %c0_81] : memref<48x128xf32, #tpu.memory_space<vmem>>, vector<1x64xf32>
    %c13 = arith.constant 13 : index
    %c0_82 = arith.constant 0 : index
    %303 = vector.load %arg2[%c13, %c0_82] : memref<48x128xf32, #tpu.memory_space<vmem>>, vector<1x32xf32>
    %c14 = arith.constant 14 : index
    %c0_83 = arith.constant 0 : index
    %304 = vector.load %arg2[%c14, %c0_83] : memref<48x128xf32, #tpu.memory_space<vmem>>, vector<1x32xf32>
    %c15 = arith.constant 15 : index
    %c0_84 = arith.constant 0 : index
    %305 = vector.load %arg2[%c15, %c0_84] : memref<48x128xf32, #tpu.memory_space<vmem>>, vector<1x32xf32>
    %306 = arith.truncf %293 : vector<16x32xf32> to vector<16x32xbf16>
    %cst_85 = arith.constant dense<0.000000e+00> : vector<16x96xf32>
    %307 = tpu.matmul %306, %294, %cst_85 {dimension_numbers = #tpu.dot_dimension_numbers<[1], [0], [0], [1], [0, 0, 1, 1], [], []>} : vector<16x32xbf16>, vector<32x96xbf16>, vector<16x96xf32> -> vector<16x96xf32>
    %308 = vector.broadcast %298 : vector<1x96xf32> to vector<16x96xf32>
    %309 = arith.addf %307, %308 : vector<16x96xf32>
    %310 = vector.extract_strided_slice %309 {offsets = [0, 0], sizes = [8, 8], strides = [1, 1]} : vector<16x96xf32> to vector<8x8xf32>
    %311 = vector.extract_strided_slice %309 {offsets = [0, 32], sizes = [8, 8], strides = [1, 1]} : vector<16x96xf32> to vector<8x8xf32>
    %312 = vector.extract_strided_slice %309 {offsets = [0, 64], sizes = [8, 8], strides = [1, 1]} : vector<16x96xf32> to vector<8x8xf32>
    %313 = arith.truncf %310 : vector<8x8xf32> to vector<8x8xbf16>
    %314 = arith.truncf %311 : vector<8x8xf32> to vector<8x8xbf16>
    %cst_86 = arith.constant dense<0.000000e+00> : vector<8x8xf32>
    %315 = tpu.matmul %313, %314, %cst_86 {dimension_numbers = #tpu.dot_dimension_numbers<[1], [1], [0], [0], [0, 0, 1, 0], [], []>} : vector<8x8xbf16>, vector<8x8xbf16>, vector<8x8xf32> -> vector<8x8xf32>
    %cst_87 = arith.constant 0.353553385 : f32
    %316 = vector.broadcast %cst_87 : f32 to vector<8x8xf32>
    %317 = arith.mulf %315, %316 : vector<8x8xf32>
    %cst_88 = arith.constant dense<0xFF800000> : vector<8xf32>
    %318 = vector.multi_reduction <maximumf>, %317, %cst_88 [1] : vector<8x8xf32> to vector<8xf32>
    %319 = vector.shape_cast %318 : vector<8xf32> to vector<8x1xf32>
    %320 = vector.broadcast %319 : vector<8x1xf32> to vector<8x8xf32>
    %321 = arith.subf %317, %320 : vector<8x8xf32>
    %322 = math.exp %321 : vector<8x8xf32>
    %cst_89 = arith.constant dense<0.000000e+00> : vector<8xf32>
    %323 = vector.multi_reduction <add>, %322, %cst_89 [1] : vector<8x8xf32> to vector<8xf32>
    %324 = vector.shape_cast %323 : vector<8xf32> to vector<8x1xf32>
    %325 = arith.truncf %322 : vector<8x8xf32> to vector<8x8xbf16>
    %326 = arith.truncf %312 : vector<8x8xf32> to vector<8x8xbf16>
    %cst_90 = arith.constant dense<0.000000e+00> : vector<8x8xf32>
    %327 = tpu.matmul %325, %326, %cst_90 {dimension_numbers = #tpu.dot_dimension_numbers<[1], [0], [0], [1], [0, 0, 1, 1], [], []>} : vector<8x8xbf16>, vector<8x8xbf16>, vector<8x8xf32> -> vector<8x8xf32>
    %328 = vector.broadcast %324 : vector<8x1xf32> to vector<8x8xf32>
    %329 = arith.divf %327, %328 : vector<8x8xf32>
    %330 = vector.extract_strided_slice %309 {offsets = [0, 8], sizes = [8, 8], strides = [1, 1]} : vector<16x96xf32> to vector<8x8xf32>
    %331 = vector.extract_strided_slice %309 {offsets = [0, 40], sizes = [8, 8], strides = [1, 1]} : vector<16x96xf32> to vector<8x8xf32>
    %332 = vector.extract_strided_slice %309 {offsets = [0, 72], sizes = [8, 8], strides = [1, 1]} : vector<16x96xf32> to vector<8x8xf32>
    %333 = arith.truncf %330 : vector<8x8xf32> to vector<8x8xbf16>
    %334 = arith.truncf %331 : vector<8x8xf32> to vector<8x8xbf16>
    %cst_91 = arith.constant dense<0.000000e+00> : vector<8x8xf32>
    %335 = tpu.matmul %333, %334, %cst_91 {dimension_numbers = #tpu.dot_dimension_numbers<[1], [1], [0], [0], [0, 0, 1, 0], [], []>} : vector<8x8xbf16>, vector<8x8xbf16>, vector<8x8xf32> -> vector<8x8xf32>
    %cst_92 = arith.constant 0.353553385 : f32
    %336 = vector.broadcast %cst_92 : f32 to vector<8x8xf32>
    %337 = arith.mulf %335, %336 : vector<8x8xf32>
    %cst_93 = arith.constant dense<0xFF800000> : vector<8xf32>
    %338 = vector.multi_reduction <maximumf>, %337, %cst_93 [1] : vector<8x8xf32> to vector<8xf32>
    %339 = vector.shape_cast %338 : vector<8xf32> to vector<8x1xf32>
    %340 = vector.broadcast %339 : vector<8x1xf32> to vector<8x8xf32>
    %341 = arith.subf %337, %340 : vector<8x8xf32>
    %342 = math.exp %341 : vector<8x8xf32>
    %cst_94 = arith.constant dense<0.000000e+00> : vector<8xf32>
    %343 = vector.multi_reduction <add>, %342, %cst_94 [1] : vector<8x8xf32> to vector<8xf32>
    %344 = vector.shape_cast %343 : vector<8xf32> to vector<8x1xf32>
    %345 = arith.truncf %342 : vector<8x8xf32> to vector<8x8xbf16>
    %346 = arith.truncf %332 : vector<8x8xf32> to vector<8x8xbf16>
    %cst_95 = arith.constant dense<0.000000e+00> : vector<8x8xf32>
    %347 = tpu.matmul %345, %346, %cst_95 {dimension_numbers = #tpu.dot_dimension_numbers<[1], [0], [0], [1], [0, 0, 1, 1], [], []>} : vector<8x8xbf16>, vector<8x8xbf16>, vector<8x8xf32> -> vector<8x8xf32>
    %348 = vector.broadcast %344 : vector<8x1xf32> to vector<8x8xf32>
    %349 = arith.divf %347, %348 : vector<8x8xf32>
    %350 = vector.extract_strided_slice %309 {offsets = [0, 16], sizes = [8, 8], strides = [1, 1]} : vector<16x96xf32> to vector<8x8xf32>
    %351 = vector.extract_strided_slice %309 {offsets = [0, 48], sizes = [8, 8], strides = [1, 1]} : vector<16x96xf32> to vector<8x8xf32>
    %352 = vector.extract_strided_slice %309 {offsets = [0, 80], sizes = [8, 8], strides = [1, 1]} : vector<16x96xf32> to vector<8x8xf32>
    %353 = arith.truncf %350 : vector<8x8xf32> to vector<8x8xbf16>
    %354 = arith.truncf %351 : vector<8x8xf32> to vector<8x8xbf16>
    %cst_96 = arith.constant dense<0.000000e+00> : vector<8x8xf32>
    %355 = tpu.matmul %353, %354, %cst_96 {dimension_numbers = #tpu.dot_dimension_numbers<[1], [1], [0], [0], [0, 0, 1, 0], [], []>} : vector<8x8xbf16>, vector<8x8xbf16>, vector<8x8xf32> -> vector<8x8xf32>
    %cst_97 = arith.constant 0.353553385 : f32
    %356 = vector.broadcast %cst_97 : f32 to vector<8x8xf32>
    %357 = arith.mulf %355, %356 : vector<8x8xf32>
    %cst_98 = arith.constant dense<0xFF800000> : vector<8xf32>
    %358 = vector.multi_reduction <maximumf>, %357, %cst_98 [1] : vector<8x8xf32> to vector<8xf32>
    %359 = vector.shape_cast %358 : vector<8xf32> to vector<8x1xf32>
    %360 = vector.broadcast %359 : vector<8x1xf32> to vector<8x8xf32>
    %361 = arith.subf %357, %360 : vector<8x8xf32>
    %362 = math.exp %361 : vector<8x8xf32>
    %cst_99 = arith.constant dense<0.000000e+00> : vector<8xf32>
    %363 = vector.multi_reduction <add>, %362, %cst_99 [1] : vector<8x8xf32> to vector<8xf32>
    %364 = vector.shape_cast %363 : vector<8xf32> to vector<8x1xf32>
    %365 = arith.truncf %362 : vector<8x8xf32> to vector<8x8xbf16>
    %366 = arith.truncf %352 : vector<8x8xf32> to vector<8x8xbf16>
    %cst_100 = arith.constant dense<0.000000e+00> : vector<8x8xf32>
    %367 = tpu.matmul %365, %366, %cst_100 {dimension_numbers = #tpu.dot_dimension_numbers<[1], [0], [0], [1], [0, 0, 1, 1], [], []>} : vector<8x8xbf16>, vector<8x8xbf16>, vector<8x8xf32> -> vector<8x8xf32>
    %368 = vector.broadcast %364 : vector<8x1xf32> to vector<8x8xf32>
    %369 = arith.divf %367, %368 : vector<8x8xf32>
    %370 = vector.extract_strided_slice %309 {offsets = [0, 24], sizes = [8, 8], strides = [1, 1]} : vector<16x96xf32> to vector<8x8xf32>
    %371 = vector.extract_strided_slice %309 {offsets = [0, 56], sizes = [8, 8], strides = [1, 1]} : vector<16x96xf32> to vector<8x8xf32>
    %372 = vector.extract_strided_slice %309 {offsets = [0, 88], sizes = [8, 8], strides = [1, 1]} : vector<16x96xf32> to vector<8x8xf32>
    %373 = arith.truncf %370 : vector<8x8xf32> to vector<8x8xbf16>
    %374 = arith.truncf %371 : vector<8x8xf32> to vector<8x8xbf16>
    %cst_101 = arith.constant dense<0.000000e+00> : vector<8x8xf32>
    %375 = tpu.matmul %373, %374, %cst_101 {dimension_numbers = #tpu.dot_dimension_numbers<[1], [1], [0], [0], [0, 0, 1, 0], [], []>} : vector<8x8xbf16>, vector<8x8xbf16>, vector<8x8xf32> -> vector<8x8xf32>
    %cst_102 = arith.constant 0.353553385 : f32
    %376 = vector.broadcast %cst_102 : f32 to vector<8x8xf32>
    %377 = arith.mulf %375, %376 : vector<8x8xf32>
    %cst_103 = arith.constant dense<0xFF800000> : vector<8xf32>
    %378 = vector.multi_reduction <maximumf>, %377, %cst_103 [1] : vector<8x8xf32> to vector<8xf32>
    %379 = vector.shape_cast %378 : vector<8xf32> to vector<8x1xf32>
    %380 = vector.broadcast %379 : vector<8x1xf32> to vector<8x8xf32>
    %381 = arith.subf %377, %380 : vector<8x8xf32>
    %382 = math.exp %381 : vector<8x8xf32>
    %cst_104 = arith.constant dense<0.000000e+00> : vector<8xf32>
    %383 = vector.multi_reduction <add>, %382, %cst_104 [1] : vector<8x8xf32> to vector<8xf32>
    %384 = vector.shape_cast %383 : vector<8xf32> to vector<8x1xf32>
    %385 = arith.truncf %382 : vector<8x8xf32> to vector<8x8xbf16>
    %386 = arith.truncf %372 : vector<8x8xf32> to vector<8x8xbf16>
    %cst_105 = arith.constant dense<0.000000e+00> : vector<8x8xf32>
    %387 = tpu.matmul %385, %386, %cst_105 {dimension_numbers = #tpu.dot_dimension_numbers<[1], [0], [0], [1], [0, 0, 1, 1], [], []>} : vector<8x8xbf16>, vector<8x8xbf16>, vector<8x8xf32> -> vector<8x8xf32>
    %388 = vector.broadcast %384 : vector<8x1xf32> to vector<8x8xf32>
    %389 = arith.divf %387, %388 : vector<8x8xf32>
    %390 = tpu.concatenate %329, %349, %369, %389 in 1 : vector<8x8xf32>, vector<8x8xf32>, vector<8x8xf32>, vector<8x8xf32> -> vector<8x32xf32>
    %391 = vector.extract_strided_slice %309 {offsets = [8, 0], sizes = [8, 8], strides = [1, 1]} : vector<16x96xf32> to vector<8x8xf32>
    %392 = vector.extract_strided_slice %309 {offsets = [8, 32], sizes = [8, 8], strides = [1, 1]} : vector<16x96xf32> to vector<8x8xf32>
    %393 = vector.extract_strided_slice %309 {offsets = [8, 64], sizes = [8, 8], strides = [1, 1]} : vector<16x96xf32> to vector<8x8xf32>
    %394 = arith.truncf %391 : vector<8x8xf32> to vector<8x8xbf16>
    %395 = arith.truncf %392 : vector<8x8xf32> to vector<8x8xbf16>
    %cst_106 = arith.constant dense<0.000000e+00> : vector<8x8xf32>
    %396 = tpu.matmul %394, %395, %cst_106 {dimension_numbers = #tpu.dot_dimension_numbers<[1], [1], [0], [0], [0, 0, 1, 0], [], []>} : vector<8x8xbf16>, vector<8x8xbf16>, vector<8x8xf32> -> vector<8x8xf32>
    %cst_107 = arith.constant 0.353553385 : f32
    %397 = vector.broadcast %cst_107 : f32 to vector<8x8xf32>
    %398 = arith.mulf %396, %397 : vector<8x8xf32>
    %cst_108 = arith.constant dense<0xFF800000> : vector<8xf32>
    %399 = vector.multi_reduction <maximumf>, %398, %cst_108 [1] : vector<8x8xf32> to vector<8xf32>
    %400 = vector.shape_cast %399 : vector<8xf32> to vector<8x1xf32>
    %401 = vector.broadcast %400 : vector<8x1xf32> to vector<8x8xf32>
    %402 = arith.subf %398, %401 : vector<8x8xf32>
    %403 = math.exp %402 : vector<8x8xf32>
    %cst_109 = arith.constant dense<0.000000e+00> : vector<8xf32>
    %404 = vector.multi_reduction <add>, %403, %cst_109 [1] : vector<8x8xf32> to vector<8xf32>
    %405 = vector.shape_cast %404 : vector<8xf32> to vector<8x1xf32>
    %406 = arith.truncf %403 : vector<8x8xf32> to vector<8x8xbf16>
    %407 = arith.truncf %393 : vector<8x8xf32> to vector<8x8xbf16>
    %cst_110 = arith.constant dense<0.000000e+00> : vector<8x8xf32>
    %408 = tpu.matmul %406, %407, %cst_110 {dimension_numbers = #tpu.dot_dimension_numbers<[1], [0], [0], [1], [0, 0, 1, 1], [], []>} : vector<8x8xbf16>, vector<8x8xbf16>, vector<8x8xf32> -> vector<8x8xf32>
    %409 = vector.broadcast %405 : vector<8x1xf32> to vector<8x8xf32>
    %410 = arith.divf %408, %409 : vector<8x8xf32>
    %411 = vector.extract_strided_slice %309 {offsets = [8, 8], sizes = [8, 8], strides = [1, 1]} : vector<16x96xf32> to vector<8x8xf32>
    %412 = vector.extract_strided_slice %309 {offsets = [8, 40], sizes = [8, 8], strides = [1, 1]} : vector<16x96xf32> to vector<8x8xf32>
    %413 = vector.extract_strided_slice %309 {offsets = [8, 72], sizes = [8, 8], strides = [1, 1]} : vector<16x96xf32> to vector<8x8xf32>
    %414 = arith.truncf %411 : vector<8x8xf32> to vector<8x8xbf16>
    %415 = arith.truncf %412 : vector<8x8xf32> to vector<8x8xbf16>
    %cst_111 = arith.constant dense<0.000000e+00> : vector<8x8xf32>
    %416 = tpu.matmul %414, %415, %cst_111 {dimension_numbers = #tpu.dot_dimension_numbers<[1], [1], [0], [0], [0, 0, 1, 0], [], []>} : vector<8x8xbf16>, vector<8x8xbf16>, vector<8x8xf32> -> vector<8x8xf32>
    %cst_112 = arith.constant 0.353553385 : f32
    %417 = vector.broadcast %cst_112 : f32 to vector<8x8xf32>
    %418 = arith.mulf %416, %417 : vector<8x8xf32>
    %cst_113 = arith.constant dense<0xFF800000> : vector<8xf32>
    %419 = vector.multi_reduction <maximumf>, %418, %cst_113 [1] : vector<8x8xf32> to vector<8xf32>
    %420 = vector.shape_cast %419 : vector<8xf32> to vector<8x1xf32>
    %421 = vector.broadcast %420 : vector<8x1xf32> to vector<8x8xf32>
    %422 = arith.subf %418, %421 : vector<8x8xf32>
    %423 = math.exp %422 : vector<8x8xf32>
    %cst_114 = arith.constant dense<0.000000e+00> : vector<8xf32>
    %424 = vector.multi_reduction <add>, %423, %cst_114 [1] : vector<8x8xf32> to vector<8xf32>
    %425 = vector.shape_cast %424 : vector<8xf32> to vector<8x1xf32>
    %426 = arith.truncf %423 : vector<8x8xf32> to vector<8x8xbf16>
    %427 = arith.truncf %413 : vector<8x8xf32> to vector<8x8xbf16>
    %cst_115 = arith.constant dense<0.000000e+00> : vector<8x8xf32>
    %428 = tpu.matmul %426, %427, %cst_115 {dimension_numbers = #tpu.dot_dimension_numbers<[1], [0], [0], [1], [0, 0, 1, 1], [], []>} : vector<8x8xbf16>, vector<8x8xbf16>, vector<8x8xf32> -> vector<8x8xf32>
    %429 = vector.broadcast %425 : vector<8x1xf32> to vector<8x8xf32>
    %430 = arith.divf %428, %429 : vector<8x8xf32>
    %431 = vector.extract_strided_slice %309 {offsets = [8, 16], sizes = [8, 8], strides = [1, 1]} : vector<16x96xf32> to vector<8x8xf32>
    %432 = vector.extract_strided_slice %309 {offsets = [8, 48], sizes = [8, 8], strides = [1, 1]} : vector<16x96xf32> to vector<8x8xf32>
    %433 = vector.extract_strided_slice %309 {offsets = [8, 80], sizes = [8, 8], strides = [1, 1]} : vector<16x96xf32> to vector<8x8xf32>
    %434 = arith.truncf %431 : vector<8x8xf32> to vector<8x8xbf16>
    %435 = arith.truncf %432 : vector<8x8xf32> to vector<8x8xbf16>
    %cst_116 = arith.constant dense<0.000000e+00> : vector<8x8xf32>
    %436 = tpu.matmul %434, %435, %cst_116 {dimension_numbers = #tpu.dot_dimension_numbers<[1], [1], [0], [0], [0, 0, 1, 0], [], []>} : vector<8x8xbf16>, vector<8x8xbf16>, vector<8x8xf32> -> vector<8x8xf32>
    %cst_117 = arith.constant 0.353553385 : f32
    %437 = vector.broadcast %cst_117 : f32 to vector<8x8xf32>
    %438 = arith.mulf %436, %437 : vector<8x8xf32>
    %cst_118 = arith.constant dense<0xFF800000> : vector<8xf32>
    %439 = vector.multi_reduction <maximumf>, %438, %cst_118 [1] : vector<8x8xf32> to vector<8xf32>
    %440 = vector.shape_cast %439 : vector<8xf32> to vector<8x1xf32>
    %441 = vector.broadcast %440 : vector<8x1xf32> to vector<8x8xf32>
    %442 = arith.subf %438, %441 : vector<8x8xf32>
    %443 = math.exp %442 : vector<8x8xf32>
    %cst_119 = arith.constant dense<0.000000e+00> : vector<8xf32>
    %444 = vector.multi_reduction <add>, %443, %cst_119 [1] : vector<8x8xf32> to vector<8xf32>
    %445 = vector.shape_cast %444 : vector<8xf32> to vector<8x1xf32>
    %446 = arith.truncf %443 : vector<8x8xf32> to vector<8x8xbf16>
    %447 = arith.truncf %433 : vector<8x8xf32> to vector<8x8xbf16>
    %cst_120 = arith.constant dense<0.000000e+00> : vector<8x8xf32>
    %448 = tpu.matmul %446, %447, %cst_120 {dimension_numbers = #tpu.dot_dimension_numbers<[1], [0], [0], [1], [0, 0, 1, 1], [], []>} : vector<8x8xbf16>, vector<8x8xbf16>, vector<8x8xf32> -> vector<8x8xf32>
    %449 = vector.broadcast %445 : vector<8x1xf32> to vector<8x8xf32>
    %450 = arith.divf %448, %449 : vector<8x8xf32>
    %451 = vector.extract_strided_slice %309 {offsets = [8, 24], sizes = [8, 8], strides = [1, 1]} : vector<16x96xf32> to vector<8x8xf32>
    %452 = vector.extract_strided_slice %309 {offsets = [8, 56], sizes = [8, 8], strides = [1, 1]} : vector<16x96xf32> to vector<8x8xf32>
    %453 = vector.extract_strided_slice %309 {offsets = [8, 88], sizes = [8, 8], strides = [1, 1]} : vector<16x96xf32> to vector<8x8xf32>
    %454 = arith.truncf %451 : vector<8x8xf32> to vector<8x8xbf16>
    %455 = arith.truncf %452 : vector<8x8xf32> to vector<8x8xbf16>
    %cst_121 = arith.constant dense<0.000000e+00> : vector<8x8xf32>
    %456 = tpu.matmul %454, %455, %cst_121 {dimension_numbers = #tpu.dot_dimension_numbers<[1], [1], [0], [0], [0, 0, 1, 0], [], []>} : vector<8x8xbf16>, vector<8x8xbf16>, vector<8x8xf32> -> vector<8x8xf32>
    %cst_122 = arith.constant 0.353553385 : f32
    %457 = vector.broadcast %cst_122 : f32 to vector<8x8xf32>
    %458 = arith.mulf %456, %457 : vector<8x8xf32>
    %cst_123 = arith.constant dense<0xFF800000> : vector<8xf32>
    %459 = vector.multi_reduction <maximumf>, %458, %cst_123 [1] : vector<8x8xf32> to vector<8xf32>
    %460 = vector.shape_cast %459 : vector<8xf32> to vector<8x1xf32>
    %461 = vector.broadcast %460 : vector<8x1xf32> to vector<8x8xf32>
    %462 = arith.subf %458, %461 : vector<8x8xf32>
    %463 = math.exp %462 : vector<8x8xf32>
    %cst_124 = arith.constant dense<0.000000e+00> : vector<8xf32>
    %464 = vector.multi_reduction <add>, %463, %cst_124 [1] : vector<8x8xf32> to vector<8xf32>
    %465 = vector.shape_cast %464 : vector<8xf32> to vector<8x1xf32>
    %466 = arith.truncf %463 : vector<8x8xf32> to vector<8x8xbf16>
    %467 = arith.truncf %453 : vector<8x8xf32> to vector<8x8xbf16>
    %cst_125 = arith.constant dense<0.000000e+00> : vector<8x8xf32>
    %468 = tpu.matmul %466, %467, %cst_125 {dimension_numbers = #tpu.dot_dimension_numbers<[1], [0], [0], [1], [0, 0, 1, 1], [], []>} : vector<8x8xbf16>, vector<8x8xbf16>, vector<8x8xf32> -> vector<8x8xf32>
    %469 = vector.broadcast %465 : vector<8x1xf32> to vector<8x8xf32>
    %470 = arith.divf %468, %469 : vector<8x8xf32>
    %471 = tpu.concatenate %410, %430, %450, %470 in 1 : vector<8x8xf32>, vector<8x8xf32>, vector<8x8xf32>, vector<8x8xf32> -> vector<8x32xf32>
    %472 = tpu.concatenate %390, %471 in 0 : vector<8x32xf32>, vector<8x32xf32> -> vector<16x32xf32>
    %473 = arith.truncf %472 : vector<16x32xf32> to vector<16x32xbf16>
    %cst_126 = arith.constant dense<0.000000e+00> : vector<16x32xf32>
    %474 = tpu.matmul %473, %295, %cst_126 {dimension_numbers = #tpu.dot_dimension_numbers<[1], [0], [0], [1], [0, 0, 1, 1], [], []>} : vector<16x32xbf16>, vector<32x32xbf16>, vector<16x32xf32> -> vector<16x32xf32>
    %475 = vector.broadcast %299 : vector<1x32xf32> to vector<16x32xf32>
    %476 = arith.addf %474, %475 : vector<16x32xf32>
    %477 = arith.addf %293, %476 : vector<16x32xf32>
    %cst_127 = arith.constant dense<0.000000e+00> : vector<16xf32>
    %478 = vector.multi_reduction <add>, %477, %cst_127 [1] : vector<16x32xf32> to vector<16xf32>
    %479 = vector.shape_cast %478 : vector<16xf32> to vector<16x1xf32>
    %cst_128 = arith.constant 3.200000e+01 : f32
    %480 = vector.broadcast %cst_128 : f32 to vector<16x1xf32>
    %481 = arith.divf %479, %480 : vector<16x1xf32>
    %482 = vector.broadcast %481 : vector<16x1xf32> to vector<16x32xf32>
    %483 = arith.subf %477, %482 : vector<16x32xf32>
    %484 = arith.mulf %483, %483 : vector<16x32xf32>
    %cst_129 = arith.constant dense<0.000000e+00> : vector<16xf32>
    %485 = vector.multi_reduction <add>, %484, %cst_129 [1] : vector<16x32xf32> to vector<16xf32>
    %486 = vector.shape_cast %485 : vector<16xf32> to vector<16x1xf32>
    %cst_130 = arith.constant 3.200000e+01 : f32
    %487 = vector.broadcast %cst_130 : f32 to vector<16x1xf32>
    %488 = arith.divf %486, %487 : vector<16x1xf32>
    %489 = vector.broadcast %481 : vector<16x1xf32> to vector<16x32xf32>
    %490 = arith.subf %477, %489 : vector<16x32xf32>
    %cst_131 = arith.constant 9.99999974E-6 : f32
    %491 = vector.broadcast %cst_131 : f32 to vector<16x1xf32>
    %492 = arith.addf %488, %491 : vector<16x1xf32>
    %493 = math.rsqrt %492 : vector<16x1xf32>
    %494 = vector.broadcast %493 : vector<16x1xf32> to vector<16x32xf32>
    %495 = arith.mulf %490, %494 : vector<16x32xf32>
    %496 = vector.broadcast %300 : vector<1x32xf32> to vector<16x32xf32>
    %497 = arith.mulf %495, %496 : vector<16x32xf32>
    %498 = vector.broadcast %301 : vector<1x32xf32> to vector<16x32xf32>
    %499 = arith.addf %497, %498 : vector<16x32xf32>
    %500 = arith.truncf %499 : vector<16x32xf32> to vector<16x32xbf16>
    %cst_132 = arith.constant dense<0.000000e+00> : vector<16x64xf32>
    %501 = tpu.matmul %500, %296, %cst_132 {dimension_numbers = #tpu.dot_dimension_numbers<[1], [0], [0], [1], [0, 0, 1, 1], [], []>} : vector<16x32xbf16>, vector<32x64xbf16>, vector<16x64xf32> -> vector<16x64xf32>
    %502 = vector.broadcast %302 : vector<1x64xf32> to vector<16x64xf32>
    %503 = arith.addf %501, %502 : vector<16x64xf32>
    %cst_133 = arith.constant 0.000000e+00 : f32
    %504 = vector.broadcast %cst_133 : f32 to vector<16x64xf32>
    %505 = arith.maximumf %503, %504 : vector<16x64xf32>
    %506 = arith.truncf %505 : vector<16x64xf32> to vector<16x64xbf16>
    %cst_134 = arith.constant dense<0.000000e+00> : vector<16x32xf32>
    %507 = tpu.matmul %506, %297, %cst_134 {dimension_numbers = #tpu.dot_dimension_numbers<[1], [0], [0], [1], [0, 0, 1, 1], [], []>} : vector<16x64xbf16>, vector<64x32xbf16>, vector<16x32xf32> -> vector<16x32xf32>
    %508 = vector.broadcast %303 : vector<1x32xf32> to vector<16x32xf32>
    %509 = arith.addf %507, %508 : vector<16x32xf32>
    %510 = arith.addf %499, %509 : vector<16x32xf32>
    %cst_135 = arith.constant dense<0.000000e+00> : vector<16xf32>
    %511 = vector.multi_reduction <add>, %510, %cst_135 [1] : vector<16x32xf32> to vector<16xf32>
    %512 = vector.shape_cast %511 : vector<16xf32> to vector<16x1xf32>
    %cst_136 = arith.constant 3.200000e+01 : f32
    %513 = vector.broadcast %cst_136 : f32 to vector<16x1xf32>
    %514 = arith.divf %512, %513 : vector<16x1xf32>
    %515 = vector.broadcast %514 : vector<16x1xf32> to vector<16x32xf32>
    %516 = arith.subf %510, %515 : vector<16x32xf32>
    %517 = arith.mulf %516, %516 : vector<16x32xf32>
    %cst_137 = arith.constant dense<0.000000e+00> : vector<16xf32>
    %518 = vector.multi_reduction <add>, %517, %cst_137 [1] : vector<16x32xf32> to vector<16xf32>
    %519 = vector.shape_cast %518 : vector<16xf32> to vector<16x1xf32>
    %cst_138 = arith.constant 3.200000e+01 : f32
    %520 = vector.broadcast %cst_138 : f32 to vector<16x1xf32>
    %521 = arith.divf %519, %520 : vector<16x1xf32>
    %522 = vector.broadcast %514 : vector<16x1xf32> to vector<16x32xf32>
    %523 = arith.subf %510, %522 : vector<16x32xf32>
    %cst_139 = arith.constant 9.99999974E-6 : f32
    %524 = vector.broadcast %cst_139 : f32 to vector<16x1xf32>
    %525 = arith.addf %521, %524 : vector<16x1xf32>
    %526 = math.rsqrt %525 : vector<16x1xf32>
    %527 = vector.broadcast %526 : vector<16x1xf32> to vector<16x32xf32>
    %528 = arith.mulf %523, %527 : vector<16x32xf32>
    %529 = vector.broadcast %304 : vector<1x32xf32> to vector<16x32xf32>
    %530 = arith.mulf %528, %529 : vector<16x32xf32>
    %531 = vector.broadcast %305 : vector<1x32xf32> to vector<16x32xf32>
    %532 = arith.addf %530, %531 : vector<16x32xf32>
    %c320 = arith.constant 320 : index
    %c0_140 = arith.constant 0 : index
    %533 = vector.load %arg1[%c320, %c0_140] : memref<384x128xbf16, #tpu.memory_space<vmem>>, vector<32x32xbf16>
    %c352 = arith.constant 352 : index
    %c0_141 = arith.constant 0 : index
    %534 = vector.load %arg1[%c352, %c0_141] : memref<384x128xbf16, #tpu.memory_space<vmem>>, vector<32x1xbf16>
    %c16 = arith.constant 16 : index
    %c0_142 = arith.constant 0 : index
    %535 = vector.load %arg2[%c16, %c0_142] : memref<48x128xf32, #tpu.memory_space<vmem>>, vector<1x32xf32>
    %c17 = arith.constant 17 : index
    %c0_143 = arith.constant 0 : index
    %536 = vector.load %arg2[%c17, %c0_143] : memref<48x128xf32, #tpu.memory_space<vmem>>, vector<1x1xf32>
    %537 = vector.extract_strided_slice %532 {offsets = [0, 0], sizes = [1, 32], strides = [1, 1]} : vector<16x32xf32> to vector<1x32xf32>
    %538 = vector.extract_strided_slice %532 {offsets = [8, 0], sizes = [1, 32], strides = [1, 1]} : vector<16x32xf32> to vector<1x32xf32>
    %539 = tpu.concatenate %537, %538 in 0 : vector<1x32xf32>, vector<1x32xf32> -> vector<2x32xf32>
    %540 = arith.truncf %539 : vector<2x32xf32> to vector<2x32xbf16>
    %cst_144 = arith.constant dense<0.000000e+00> : vector<2x32xf32>
    %541 = tpu.matmul %540, %533, %cst_144 {dimension_numbers = #tpu.dot_dimension_numbers<[1], [0], [0], [1], [0, 0, 1, 1], [], []>} : vector<2x32xbf16>, vector<32x32xbf16>, vector<2x32xf32> -> vector<2x32xf32>
    %542 = vector.broadcast %535 : vector<1x32xf32> to vector<2x32xf32>
    %543 = arith.addf %541, %542 : vector<2x32xf32>
    %cst_145 = arith.constant 0.000000e+00 : f32
    %544 = vector.broadcast %cst_145 : f32 to vector<2x32xf32>
    %545 = arith.maximumf %543, %544 : vector<2x32xf32>
    %546 = arith.truncf %545 : vector<2x32xf32> to vector<2x32xbf16>
    %cst_146 = arith.constant dense<0.000000e+00> : vector<2x1xf32>
    %547 = tpu.matmul %546, %534, %cst_146 {dimension_numbers = #tpu.dot_dimension_numbers<[1], [0], [0], [1], [0, 0, 1, 1], [], []>} : vector<2x32xbf16>, vector<32x1xbf16>, vector<2x1xf32> -> vector<2x1xf32>
    %548 = vector.broadcast %536 : vector<1x1xf32> to vector<2x1xf32>
    %549 = arith.addf %547, %548 : vector<2x1xf32>
    %c0_147 = arith.constant 0 : index
    %c0_148 = arith.constant 0 : index
    %550 = vector.load %arg3[%c0_147, %c0_148] : memref<2x1xf32, #tpu.memory_space<vmem>>, vector<2x1xf32>
    tpu.vector_store %arg3[%c0_147, %c0_148], %549 {strides = array<i32>} : memref<2x1xf32, #tpu.memory_space<vmem>>, vector<2x1xf32>,
    return
  }
}

</mosaic_0001>

<bundles_post_ra>
// kernel: joint_model_forward.1
= control target key start
LH: loop header
LB: loop body
LE: loop exit
PB: predicated region body
PF: predicated region fallthrough
CT: control target
= control target key end

     0   :  { %8 = vsyncpa [#allocation3], 0  ;;  %s4028_s0 = inlined_call_operand.vmem [shape: s32[16,1], index: 0, kind: input, shape index: {}]   ;;  %s4029_s1 = inlined_call_operand.hbm [shape: bf16[384,128], index: 1, kind: input, shape index: {}]   ;;  %s4030_s2 = inlined_call_operand.hbm [shape: f32[48,128], index: 2, kind: input, shape index: {}]   ;;  %s4031_s3 = inlined_call_operand.vmem [shape: f32[2,1], index: 3, kind: output, shape index: {}]  }
   0x1   :  { %9 = vsyncpa [#allocation5], 0  ;;  %s3505_s12 = smov [#allocation2]   ;;  %s3457_s16 = scalar_lea.hbm %s4029_s1, 3072 }
   0x2   :  { %s17_s13 = sshll.u32 %s3505_s12, 4  ;;  %p3458_p0 = scmp.ne.s32.totalorder %s4029_s1, %s3457_s16  ;;  %s18_s13 = int_to_ptr.vmem [resolvable:$true] %s17_s13 }
   0x3   :  { %p3461_p1 = scmp.lt.u32.totalorder %s3457_s16, %s4029_s1 }
   0x5   :  { %p3463_p2 = pnand %p3461_p1, %p3458_p0 }
   0x7   :  { %3466 = shalt.err (!%p3463_p2)
}
   0x8   :  { %s3467_s21 = scalar_lea.vmem %s18_s13, 3072  ;;  %p3472_p4 = scmp.lt.s32.totalorder %s18_s13, %s18_s13 }
   0x9   :  { %p3468_p3 = scmp.ne.s32.totalorder %s18_s13, %s3467_s21  ;;  %p3473_p5 = scmp.lt.s32.totalorder %s3467_s21, %s3467_s21 }
   0xb   :  { %p3474_p6 = por %p3473_p5, %p3472_p4 }
   0xd   :  { %p3475_p7 = pnand %p3474_p6, %p3468_p3 }
   0xf   :  { %3478 = shalt.err (!%p3475_p7)
}
  0x10   :  { %s3506_s22 = smov 64   ;;  %s3507_s23 = smov 4  }
  0x11   :  { %23 = dma.hbm_to_vmem [thread:$0]  %s4029_s1, 3072, %s18_s13, [#allocation3], %s3506_s22, %s3506_s22, %s3507_s23  }
  0x12   :  { %s3508_s26 = smov [#allocation4]   ;;  %s3479_s30 = scalar_lea.hbm %s4030_s2, 768 }
  0x13   :  { %s29_s27 = sshll.u32 %s3508_s26, 4  ;;  %p3480_p8 = scmp.ne.s32.totalorder %s4030_s2, %s3479_s30  ;;  %s30_s27 = int_to_ptr.vmem [resolvable:$true] %s29_s27 }
  0x14   :  { %p3483_p9 = scmp.lt.u32.totalorder %s3479_s30, %s4030_s2 }
  0x16   :  { %p3485_p10 = pnand %p3483_p9, %p3480_p8 }
  0x18   :  { %3488 = shalt.err (!%p3485_p10)
}
  0x19   :  { %s3489_s8 = scalar_lea.vmem %s30_s27, 768  ;;  %p3494_p12 = scmp.lt.s32.totalorder %s30_s27, %s30_s27 }
  0x1a   :  { %p3490_p11 = scmp.ne.s32.totalorder %s30_s27, %s3489_s8  ;;  %p3495_p13 = scmp.lt.s32.totalorder %s3489_s8, %s3489_s8 }
  0x1c   :  { %p3496_p0 = por %p3495_p13, %p3494_p12 }
  0x1e   :  { %p3497_p1 = pnand %p3496_p0, %p3490_p11 }
  0x20   :  { %3500 = shalt.err (!%p3497_p1)
}
  0x21   :  { %s3509_s1 = smov 128   ;;  %s3510_s9 = smov 8  }
  0x22   :  { %35 = dma.hbm_to_vmem [thread:$0]  %s4030_s2, 768, %s30_s27, [#allocation5], %s3509_s1, %s3509_s1, %s3510_s9  }
  0x23   :  { %3501 = dma.done.wait [#allocation3], 3072  }
  0x24   :  { %3502 = vsyncadd [#allocation3], 4294964224 }
  0x25   :  { %3503 = dma.done.wait [#allocation5], 768  }
  0x26   :  { %3504 = vsyncadd [#allocation5], 4294966528  ;;  %v3511_v0 = vmov 0   ;;  %v43_v1 = vld [vmem:[%s4028_s0] sm:$0xff]  ;;  %v44_v2 = vld [vmem:[%s4028_s0 + $0x8] sm:$0xff]  ;;  %v3512_v4 = vmov 0.0   ;;  %v54_v6 = vlaneseq }
  0x27   :  { %3322 = vset.pattern.permute.xlu0 %v3511_v0  ;;  %v3353_v3 = vld [vmem:[#allocation2] sm:$0xff]   ;;  %3021 = vmatprep.subr.bf16.mxu0 %v3512_v4  ;;  %v3354_v5 = vld [vmem:[#allocation2 + $0x8] sm:$0xff]   ;;  %vm3513_vm0 = vmmov 0   ;;  %v51_v9 = vld [vmem:[#allocation4 + $0x18] sm:$0xff]  ;;  %s3514_s0 = smov 120   ;;  %s3515_s2 = smov 96  }
  0x28   :  { %46 = vperm.xlu0 %3322, %v43_v1   ;;  %3025 = vmatprep.mubr.msk.bf16.mxu0 %vm3513_vm0, %v3512_v4  ;;  %v55_v7 = vshrl.u32 %v54_v6, 7  ;;  %v52_v39 = vld [vmem:[#allocation4 + $0x20] sm:$0xff]  ;;  %v53_v40 = vld [vmem:[#allocation4 + $0x28] sm:$0xff]  ;;  %s3516_s16 = smov 112   ;;  %s3517_s17 = smov 88  }
  0x29   :  { %3022 = vmatpush3.bf16.msra.mxu0 %v3353_v3  ;;  %3029 = vmatprep.subr.bf16.mxu1 %v3512_v4  ;;  %v2839_v48 = vld [vmem:[#allocation4] ss:$0 sm:$0xff]  ;;  %s3518_s18 = smov 104   ;;  %s3519_s19 = smov 80  }
  0x2a   :  { %3023 = vmatprep.subr.bf16.mxu0 %v3512_v4  ;;  %3031 = vmatprep.mubr.msk.bf16.mxu1 %vm3513_vm0, %v3512_v4  ;;  %v56_v8 = vsub.s32 0, %v55_v7  ;;  %v64_v10 = vsub.s32 1, %v55_v7  ;;  %v72_v11 = vsub.s32 2, %v55_v7  ;;  %v80_v13 = vsub.s32 3, %v55_v7  ;;  %s3520_s20 = smov 72   ;;  %s3521_s21 = smov 56  }
  0x2b   :  { %v88_v15 = vsub.s32 4, %v55_v7  ;;  %v96_v18 = vsub.s32 5, %v55_v7  ;;  %v104_v19 = vsub.s32 6, %v55_v7  ;;  %v112_v22 = vsub.s32 7, %v55_v7  ;;  %s3522_s23 = smov 48   ;;  %s3523_s24 = smov 40  }
  0x2c   :  { %49 = vperm.xlu0 %3322, %v44_v2   ;;  %v57_v12 = vrot.slane %v51_v9, %v56_v8  ;;  %v65_v14 = vrot.slane %v51_v9, %v64_v10  ;;  %v73_v17 = vrot.slane %v51_v9, %v72_v11  ;;  %v81_v21 = vrot.slane %v51_v9, %v80_v13  ;;  %s3524_s25 = smov 16   ;;  %s3525_s26 = smov 24  }
  0x2d   :  { %3024 = vmatpush3.bf16.msra.mxu0 %v3354_v5  ;;  %v89_v24 = vrot.slane %v51_v9, %v88_v15  ;;  %v97_v27 = vrot.slane %v51_v9, %v96_v18  ;;  %v105_v28 = vrot.slane %v51_v9, %v104_v19  ;;  %v113_v31 = vrot.slane %v51_v9, %v112_v22 }
  0x2e   :  { %3035 = vmatprep.subr.bf16.mxu0 %v3512_v4 }
  0xa7   :  { %v47_v16 = vpop.permute.xlu0 %46 }
  0xa8   :  { %vm58_vm1 = vcmp.eq.s32.totalorder %v47_v16, 0  ;;  %vm66_vm2 = vcmp.eq.s32.totalorder %v47_v16, 1  ;;  %vm74_vm3 = vcmp.eq.s32.totalorder %v47_v16, 2  ;;  %vm82_vm6 = vcmp.eq.s32.totalorder %v47_v16, 3 }
  0xa9   :  { %v60_v20 = vsel %vm58_vm1, %v57_v12, 0.0  ;;  %vm90_vm7 = vcmp.eq.s32.totalorder %v47_v16, 4  ;;  %vm98_vm9 = vcmp.eq.s32.totalorder %v47_v16, 5  ;;  %vm106_vm11 = vcmp.eq.s32.totalorder %v47_v16, 6 }
  0xaa   :  { %v68_v23 = vsel %vm66_vm2, %v65_v14, %v60_v20  ;;  %vm114_vm14 = vcmp.eq.s32.totalorder %v47_v16, 7  ;;  %vm165_vm2 = vcmask 261120  }
  0xab   :  { %v50_v25 = vpop.permute.xlu0 %49  ;;  %v76_v26 = vsel %vm74_vm3, %v73_v17, %v68_v23  ;;  %vm214_vm3 = vcmask 64512  }
  0xac   :  { %vm59_vm4 = vcmp.eq.s32.totalorder %v50_v25, 0  ;;  %vm67_vm5 = vcmp.eq.s32.totalorder %v50_v25, 1  ;;  %v84_v30 = vsel %vm82_vm6, %v81_v21, %v76_v26  ;;  %vm75_vm8 = vcmp.eq.s32.totalorder %v50_v25, 2 }
  0xad   :  { %v61_v29 = vsel %vm59_vm4, %v57_v12, 0.0  ;;  %v92_v33 = vsel %vm90_vm7, %v89_v24, %v84_v30  ;;  %vm83_vm10 = vcmp.eq.s32.totalorder %v50_v25, 3  ;;  %vm91_vm12 = vcmp.eq.s32.totalorder %v50_v25, 4 }
  0xae   :  { %v69_v32 = vsel %vm67_vm5, %v65_v14, %v61_v29  ;;  %v100_v35 = vsel %vm98_vm9, %v97_v27, %v92_v33  ;;  %vm99_vm13 = vcmp.eq.s32.totalorder %v50_v25, 5  ;;  %vm107_vm15 = vcmp.eq.s32.totalorder %v50_v25, 6 }
  0xaf   :  { %v77_v34 = vsel %vm75_vm8, %v73_v17, %v69_v32  ;;  %v108_v37 = vsel %vm106_vm11, %v105_v28, %v100_v35  ;;  %vm115_vm1 = vcmp.eq.s32.totalorder %v50_v25, 7  ;;  %vm277_vm4 = vcmask 1043456  }
  0xb0   :  { %v85_v36 = vsel %vm83_vm10, %v81_v21, %v77_v34  ;;  %v116_v42 = vsel %vm114_vm14, %v113_v31, %v108_v37  ;;  %vm669_vm5 = vcmask 130048   ;;  %vm671_vm6 = vcmask 195584  }
  0xb1   :  { %v93_v38 = vsel %vm91_vm12, %v89_v24, %v85_v36  ;;  %v3587_v45 = vadd.f32 %v116_v42, %v52_v39  ;;  %vm1326_vm7 = vcmask 523264   ;;  %vm2708_vm8 = vcmask 1040384  }
  0xb2   :  { %v101_v41 = vsel %vm99_vm13, %v97_v27, %v93_v38  ;;  %vm2831_vm9 = vcmask 1024  }
  0xb3   :  { %v109_v43 = vsel %vm107_vm15, %v105_v28, %v101_v41 }
  0xb4   :  { %v117_v44 = vsel %vm115_vm1, %v113_v31, %v109_v43 }
  0xb5   :  { %v3589_v46 = vadd.f32 %v117_v44, %v53_v40 }
  0xb7   :  { %v148_v47 = vpack.c.bf16 %v3589_v46, %v3587_v45 }
  0xb9   :  { %3026 = vmatmul.mubr.msk.bf16.vlgmr.msra.gmra.mrb[0].mxu0 %vm165_vm2, %v148_v47 }
  0xba   :  { %3037 = vmatprep.mubr.msk.bf16.mxu0 %vm3513_vm0, %v3512_v4 }
 0x18c   :  { %v203_v49 = vpop.f32.mrb[0].mxu0 }
 0x18d   :  { %v204_v50 = vadd.f32 %v2839_v48, %v203_v49  ;;  %v3027_v51 = vpop.f32.mrb[1].mxu0 }
 0x18e   :  { %v206_v52 = vpop.f32.mrb[2].mxu0 }
 0x18f   :  { %v3596_v53 = vpack.c.bf16 %v204_v50, %v204_v50  ;;  %v3028_v54 = vpop.f32.mrb[3].mxu0  ;;  %v207_v55 = vadd.f32 %v2839_v48, %v206_v52 }
 0x191   :  { %323 = vrot.lane.b32.xlu0 %v3596_v53, %s3514_s0  ;;  %212 = vrot.lane.b32.xlu1 %v3596_v53, %s3515_s2  ;;  %v3610_v56 = vpack.c.bf16 %v207_v55, %v207_v55 }
 0x195   :  { %434 = vrot.lane.b32.xlu0 %v3596_v53, %s3516_s16  ;;  %325 = vrot.lane.b32.xlu1 %v3596_v53, %s3517_s17 }
 0x199   :  { %545 = vrot.lane.b32.xlu0 %v3596_v53, %s3518_s18  ;;  %436 = vrot.lane.b32.xlu1 %v3596_v53, %s3519_s19 }
 0x19d   :  { %547 = vrot.lane.b32.xlu1 %v3596_v53, %s3520_s20  ;;  %786 = vrot.lane.b32.xlu0 %v3610_v56, %s3517_s17 }
 0x1a1   :  { %897 = vrot.lane.b32.xlu0 %v3610_v56, %s3519_s19  ;;  %675 = vrot.lane.b32.xlu1 %v3610_v56, %s3515_s2 }
 0x1a5   :  { %1008 = vrot.lane.b32.xlu0 %v3610_v56, %s3520_s20  ;;  %784 = vrot.lane.b32.xlu1 %v3610_v56, %s3514_s0 }
 0x1a9   :  { %384 = vrot.lane.b32.xlu0 %v3596_v53, %s3521_s21  ;;  %895 = vrot.lane.b32.xlu1 %v3610_v56, %s3516_s16 }
 0x1ad   :  { %1006 = vrot.lane.b32.xlu1 %v3610_v56, %s3518_s18 }
 0x1b1   :  { %272 = vrot.lane.b32.xlu1 %v3596_v53, %s3506_s22 }
 0x203   :  { %v213_v57 = vpop.permute.xlu1 %212  ;;  %v324_v63 = vpop.permute.xlu0 %323 }
 0x204   :  { %v219_v58 = vsel %vm214_vm3, %v213_v57, 0 }
 0x205   :  { %3030 = vmatpush3.bf16.xpose.msra.mxu1 %v219_v58 }
 0x206   :  { %3041 = vmatprep.subr.bf16.mxu1 %v3512_v4 }
 0x207   :  { %v326_v59 = vpop.permute.xlu1 %325  ;;  %v435_v3 = vpop.permute.xlu0 %434 }
 0x208   :  { %v331_v61 = vsel %vm214_vm3, %v326_v59, 0 }
 0x20b   :  { %v437_v60 = vpop.permute.xlu1 %436  ;;  %v546_v8 = vpop.permute.xlu0 %545 }
 0x20c   :  { %3032 = vmatmul.mubr.msk.bf16.vlgmr.msra.gmra.mrb[0].mxu1 %vm214_vm3, %v3596_v53  ;;  %v442_v1 = vsel %vm214_vm3, %v437_v60, 0 }
 0x20d   :  { %3042 = vmatpush3.bf16.xpose.msra.mxu1 %v331_v61  ;;  %3043 = vmatprep.mubr.msk.bf16.mxu1 %vm3513_vm0, %v3512_v4 }
 0x20e   :  { %3053 = vmatprep.subr.bf16.mxu1 %v3512_v4 }
 0x20f   :  { %v548_v62 = vpop.permute.xlu1 %547  ;;  %v787_v12 = vpop.permute.xlu0 %786 }
 0x210   :  { %v553_v6 = vsel %vm214_vm3, %v548_v62, 0  ;;  %v792_v13 = vsel %vm214_vm3, %v787_v12, 0 }
 0x213   :  { %v676_v0 = vpop.permute.xlu1 %675  ;;  %v898_v14 = vpop.permute.xlu0 %897 }
 0x214   :  { %3044 = vmatmul.mubr.msk.bf16.vlgmr.msra.gmra.mrb[4].mxu1 %vm214_vm3, %v324_v63  ;;  %v681_v10 = vsel %vm214_vm3, %v676_v0, 0  ;;  %v903_v15 = vsel %vm214_vm3, %v898_v14, 0 }
 0x215   :  { %3054 = vmatpush3.bf16.xpose.msra.mxu1 %v442_v1  ;;  %3055 = vmatprep.mubr.msk.bf16.mxu1 %vm3513_vm0, %v3512_v4 }
 0x216   :  { %3065 = vmatprep.subr.bf16.mxu1 %v3512_v4 }
 0x217   :  { %v785_v2 = vpop.permute.xlu1 %784  ;;  %v1009_v16 = vpop.permute.xlu0 %1008 }
 0x218   :  { %v1014_v17 = vsel %vm214_vm3, %v1009_v16, 0 }
 0x21b   :  { %v896_v5 = vpop.permute.xlu1 %895 }
 0x21c   :  { %3056 = vmatmul.mubr.msk.bf16.vlgmr.msra.gmra.mrb[8].mxu1 %vm214_vm3, %v435_v3 }
 0x21d   :  { %3066 = vmatpush3.bf16.xpose.msra.mxu1 %v553_v6  ;;  %3067 = vmatprep.mubr.msk.bf16.mxu1 %vm3513_vm0, %v3512_v4  ;;  %v385_v6 = vpop.permute.xlu0 %384 }
 0x21e   :  { %3077 = vmatprep.subr.bf16.mxu1 %v3512_v4 }
 0x21f   :  { %v1007_v7 = vpop.permute.xlu1 %1006 }
 0x223   :  { %v273_v9 = vpop.permute.xlu1 %272 }
 0x224   :  { %v279_v11 = vsel %vm277_vm4, %v273_v9, 0  ;;  %3068 = vmatmul.mubr.msk.bf16.vlgmr.msra.gmra.mrb[12].mxu1 %vm214_vm3, %v546_v8 }
 0x225   :  { %3036 = vmatpush3.bf16.msra.mxu0 %v279_v11  ;;  %3078 = vmatpush3.bf16.xpose.msra.mxu1 %v681_v10 }
 0x226   :  { %3079 = vmatprep.mubr.msk.bf16.mxu1 %vm3513_vm0, %v3512_v4  ;;  %3089 = vmatprep.subr.bf16.mxu1 %v3512_v4 }
 0x227   :  { %3047 = vmatprep.subr.bf16.mxu0 %v3512_v4 }
 0x22c   :  { %3080 = vmatmul.mubr.msk.bf16.vlgmr.msra.gmra.mrb[16].mxu1 %vm214_vm3, %v3610_v56 }
 0x22d   :  { %3090 = vmatpush3.bf16.xpose.msra.mxu1 %v792_v13  ;;  %3091 = vmatprep.mubr.msk.bf16.mxu1 %vm3513_vm0, %v3512_v4 }
 0x22e   :  { %3101 = vmatprep.subr.bf16.mxu1 %v3512_v4 }
 0x234   :  { %3092 = vmatmul.mubr.msk.bf16.vlgmr.msra.gmra.mrb[20].mxu1 %vm214_vm3, %v785_v2 }
 0x235   :  { %3102 = vmatpush3.bf16.xpose.msra.mxu1 %v903_v15  ;;  %3103 = vmatprep.mubr.msk.bf16.mxu1 %vm3513_vm0, %v3512_v4  ;;  %v390_v15 = vsel %vm277_vm4, %v385_v6, 0 }
 0x236   :  { %3113 = vmatprep.subr.bf16.mxu1 %v3512_v4 }
 0x23c   :  { %3104 = vmatmul.mubr.msk.bf16.vlgmr.msra.gmra.mrb[24].mxu1 %vm214_vm3, %v896_v5 }
 0x23d   :  { %3114 = vmatpush3.bf16.xpose.msra.mxu1 %v1014_v17  ;;  %3115 = vmatprep.mubr.msk.bf16.mxu1 %vm3513_vm0, %v3512_v4 }
 0x23e   :  { %3125 = vmatprep.subr.bf16.mxu1 %v3512_v4 }
 0x244   :  { %3116 = vmatmul.mubr.msk.bf16.vlgmr.msra.gmra.mrb[28].mxu1 %vm214_vm3, %v1007_v7 }
 0x245   :  { %3129 = vmatprep.mubr.msk.bf16.mxu1 %vm3513_vm0, %v3512_v4 }
 0x2df   :  { %v255_v18 = vpop.f32.mrb[0].mxu1 }
 0x2e0   :  { %v3676_v19 = vmul.f32 0.35355338, %v255_v18  ;;  %v3033_v20 = vpop.f32.mrb[1].mxu1 }
 0x2e1   :  { %v258_v21 = vpop.f32.mrb[2].mxu1 }
 0x2e2   :  { %v3034_v22 = vpop.f32.mrb[3].mxu1  ;;  %v262_v23 = vsel %vm214_vm3, %v3676_v19, -inf }
 0x2e3   :  { %263 = vmax.xlane.f32.xlu0 %v262_v23 }
 0x2e7   :  { %v367_v24 = vpop.f32.mrb[4].mxu1 }
 0x2e8   :  { %v3680_v25 = vmul.f32 0.35355338, %v367_v24  ;;  %v3045_v26 = vpop.f32.mrb[5].mxu1 }
 0x2e9   :  { %v370_v27 = vpop.f32.mrb[6].mxu1 }
 0x2ea   :  { %v3046_v28 = vpop.f32.mrb[7].mxu1  ;;  %v374_v29 = vsel %vm214_vm3, %v3680_v25, -inf }
 0x2eb   :  { %375 = vmax.xlane.f32.xlu1 %v374_v29 }
 0x2ef   :  { %v478_v30 = vpop.f32.mrb[8].mxu1 }
 0x2f0   :  { %v3057_v31 = vpop.f32.mrb[9].mxu1  ;;  %v484_v52 = vmul.f32 0.35355338, %v478_v30 }
 0x2f1   :  { %v481_v32 = vpop.f32.mrb[10].mxu1 }
 0x2f2   :  { %v3058_v33 = vpop.f32.mrb[11].mxu1  ;;  %v485_v57 = vsel %vm214_vm3, %v484_v52, -inf }
 0x2f7   :  { %v589_v34 = vpop.f32.mrb[12].mxu1 }
 0x2f8   :  { %v3069_v35 = vpop.f32.mrb[13].mxu1  ;;  %v595_v54 = vmul.f32 0.35355338, %v589_v34 }
 0x2f9   :  { %v592_v36 = vpop.f32.mrb[14].mxu1  ;;  %495 = vrot.lane.b32.xlu0 %v3596_v53, %s3522_s23 }
 0x2fa   :  { %v3070_v37 = vpop.f32.mrb[15].mxu1  ;;  %v596_v62 = vsel %vm214_vm3, %v595_v54, -inf }
 0x2fc   :  { %606 = vrot.lane.b32.xlu1 %v3596_v53, %s3523_s24 }
 0x2ff   :  { %v717_v38 = vpop.f32.mrb[16].mxu1 }
 0x300   :  { %v3081_v39 = vpop.f32.mrb[17].mxu1  ;;  %v723_v60 = vmul.f32 0.35355338, %v717_v38 }
 0x301   :  { %v720_v40 = vpop.f32.mrb[18].mxu1 }
 0x302   :  { %v3082_v41 = vpop.f32.mrb[19].mxu1  ;;  %v724_v0 = vsel %vm214_vm3, %v723_v60, -inf }
 0x307   :  { %v828_v42 = vpop.f32.mrb[20].mxu1 }
 0x308   :  { %v3093_v43 = vpop.f32.mrb[21].mxu1  ;;  %v834_v61 = vmul.f32 0.35355338, %v828_v42 }
 0x309   :  { %v831_v44 = vpop.f32.mrb[22].mxu1 }
 0x30a   :  { %v3094_v47 = vpop.f32.mrb[23].mxu1  ;;  %v835_v1 = vsel %vm214_vm3, %v834_v61, -inf }
 0x30f   :  { %v939_v48 = vpop.f32.mrb[24].mxu1 }
 0x310   :  { %v3105_v49 = vpop.f32.mrb[25].mxu1  ;;  %v945_v63 = vmul.f32 0.35355338, %v939_v48 }
 0x311   :  { %v942_v50 = vpop.f32.mrb[26].mxu1 }
 0x312   :  { %v3106_v51 = vpop.f32.mrb[27].mxu1  ;;  %v946_v3 = vsel %vm214_vm3, %v945_v63, -inf }
 0x317   :  { %v1050_v55 = vpop.f32.mrb[28].mxu1 }
 0x318   :  { %486 = vmax.xlane.f32.xlu0 %v485_v57  ;;  %v3117_v58 = vpop.f32.mrb[29].mxu1  ;;  %v3692_v2 = vmul.f32 0.35355338, %v1050_v55 }
 0x319   :  { %v1053_v53 = vpop.f32.mrb[30].mxu1 }
 0x31a   :  { %v3118_v59 = vpop.f32.mrb[31].mxu1  ;;  %v1057_v5 = vsel %vm214_vm3, %v3692_v2, -inf }
 0x31c   :  { %597 = vmax.xlane.f32.xlu0 %v596_v62 }
 0x320   :  { %725 = vmax.xlane.f32.xlu0 %v724_v0  ;;  %836 = vmax.xlane.f32.xlu1 %v835_v1 }
 0x324   :  { %947 = vmax.xlane.f32.xlu0 %v946_v3 }
 0x328   :  { %1058 = vmax.xlane.f32.xlu0 %v1057_v5 }
 0x331   :  { %845 = vrot.lane.b32.xlu1 %v3610_v56, %s3521_s21 }
 0x335   :  { %956 = vrot.lane.b32.xlu1 %v3610_v56, %s3522_s23 }
 0x339   :  { %1067 = vrot.lane.b32.xlu1 %v3610_v56, %s3523_s24 }
 0x33e   :  { %734 = vrot.lane.b32.xlu0 %v3610_v56, %s3506_s22 }
 0x370   :  { %v264_v7 = vpop.xlane.xlu0 %263 }
 0x371   :  { %v265_v8 = vsub.f32 %v3676_v19, %v264_v7 }
 0x373   :  { %v266_v9 = vmul.f32 1.442695, %v265_v8 }
 0x374   :  { %v496_v16 = vpop.permute.xlu0 %495 }
 0x375   :  { %3377 = vpow2.f32 %v266_v9  ;;  %v501_v19 = vsel %vm277_vm4, %v496_v16, 0 }
 0x378   :  { %v376_v10 = vpop.xlane.xlu1 %375 }
 0x379   :  { %v377_v11 = vsub.f32 %v3680_v25, %v376_v10 }
 0x37b   :  { %v378_v12 = vmul.f32 1.442695, %v377_v11 }
 0x37c   :  { %v607_v23 = vpop.permute.xlu1 %606 }
 0x37d   :  { %3379 = vpow2.f32 %v378_v12  ;;  %v612_v41 = vsel %vm277_vm4, %v607_v23, 0 }
 0x37f   :  { %v3378_v13 = vpop.eup %3377 }
 0x380   :  { %v271_v14 = vpack.c.bf16 %v3378_v13, %v3378_v13  ;;  %v268_v49 = vsel %vm214_vm3, %v3378_v13, 0.0 }
 0x382   :  { %3038 = vmatmul.mubr.msk.bf16.vlgmr.msra.gmra.mrb[4].mxu0 %vm214_vm3, %v271_v14 }
 0x383   :  { %3048 = vmatpush3.bf16.msra.mxu0 %v390_v15  ;;  %3049 = vmatprep.mubr.msk.bf16.mxu0 %vm3513_vm0, %v3512_v4 }
 0x384   :  { %3059 = vmatprep.subr.bf16.mxu0 %v3512_v4 }
 0x387   :  { %v3380_v56 = vpop.eup %3379 }
 0x388   :  { %v380_v17 = vsel %vm214_vm3, %v3380_v56, 0.0  ;;  %v383_v18 = vpack.c.bf16 %v3380_v56, %v3380_v56 }
 0x389   :  { %381 = vadd.xlane.f32.xlu1 %v380_v17 }
 0x38a   :  { %3050 = vmatmul.mubr.msk.bf16.vlgmr.msra.gmra.mrb[8].mxu0 %vm214_vm3, %v383_v18 }
 0x38b   :  { %3060 = vmatpush3.bf16.msra.mxu0 %v501_v19  ;;  %3061 = vmatprep.mubr.msk.bf16.mxu0 %vm3513_vm0, %v3512_v4 }
 0x38c   :  { %3071 = vmatprep.subr.bf16.mxu0 %v3512_v4 }
 0x3a5   :  { %v487_v20 = vpop.xlane.xlu0 %486 }
 0x3a6   :  { %v488_v21 = vsub.f32 %v484_v52, %v487_v20 }
 0x3a8   :  { %v489_v22 = vmul.f32 1.442695, %v488_v21 }
 0x3a9   :  { %v598_v24 = vpop.xlane.xlu0 %597 }
 0x3aa   :  { %3381 = vpow2.f32 %v489_v22  ;;  %v599_v25 = vsub.f32 %v595_v54, %v598_v24 }
 0x3ac   :  { %v600_v26 = vmul.f32 1.442695, %v599_v25 }
 0x3ad   :  { %v726_v27 = vpop.xlane.xlu0 %725  ;;  %v837_v28 = vpop.xlane.xlu1 %836 }
 0x3ae   :  { %3383 = vpow2.f32 %v600_v26  ;;  %v838_v29 = vsub.f32 %v834_v61, %v837_v28  ;;  %v727_v30 = vsub.f32 %v723_v60, %v726_v27 }
 0x3b0   :  { %v839_v31 = vmul.f32 1.442695, %v838_v29  ;;  %v728_v35 = vmul.f32 1.442695, %v727_v30 }
 0x3b1   :  { %v948_v32 = vpop.xlane.xlu0 %947  ;;  %v846_v53 = vpop.permute.xlu1 %845 }
 0x3b2   :  { %v949_v33 = vsub.f32 %v945_v63, %v948_v32  ;;  %3385 = vpow2.f32 %v839_v31  ;;  %v851_v61 = vsel %vm277_vm4, %v846_v53, 0 }
 0x3b4   :  { %v3382_v34 = vpop.eup %3381  ;;  %v950_v36 = vmul.f32 1.442695, %v949_v33 }
 0x3b5   :  { %v1059_v37 = vpop.xlane.xlu0 %1058  ;;  %v491_v38 = vsel %vm214_vm3, %v3382_v34, 0.0  ;;  %v494_v39 = vpack.c.bf16 %v3382_v34, %v3382_v34  ;;  %v957_v63 = vpop.permute.xlu1 %956 }
 0x3b6   :  { %3387 = vpow2.f32 %v950_v36  ;;  %v1060_v40 = vsub.f32 %v3692_v2, %v1059_v37  ;;  %492 = vadd.xlane.f32.xlu1 %v491_v38  ;;  %v962_v1 = vsel %vm277_vm4, %v957_v63, 0  ;;  %v3355_v38 = vld [vmem:[#allocation2 + $0x10] sm:$0xff]  }
 0x3b7   :  { %3062 = vmatmul.mubr.msk.bf16.vlgmr.msra.gmra.mrb[12].mxu0 %vm214_vm3, %v494_v39  ;;  %3389 = vpow2.f32 %v728_v35  ;;  %3126 = vmatpush3.bf16.msra.mxu1 %v3355_v38 }
 0x3b8   :  { %v3384_v42 = vpop.eup %3383  ;;  %v1061_v43 = vmul.f32 1.442695, %v1060_v40  ;;  %3072 = vmatpush3.bf16.msra.mxu0 %v612_v41  ;;  %3073 = vmatprep.mubr.msk.bf16.mxu0 %vm3513_vm0, %v3512_v4 }
 0x3b9   :  { %v602_v44 = vsel %vm214_vm3, %v3384_v42, 0.0  ;;  %3083 = vmatprep.subr.bf16.mxu0 %v3512_v4  ;;  %v735_v47 = vpop.permute.xlu0 %734  ;;  %v605_v50 = vpack.c.bf16 %v3384_v42, %v3384_v42  ;;  %v1068_v2 = vpop.permute.xlu1 %1067  ;;  %3127 = vmatprep.subr.bf16.mxu1 %v3512_v4 }
 0x3ba   :  { %3391 = vpow2.f32 %v1061_v43  ;;  %603 = vadd.xlane.f32.xlu1 %v602_v44  ;;  %v740_v52 = vsel %vm277_vm4, %v735_v47, 0  ;;  %v1073_v5 = vsel %vm277_vm4, %v1068_v2, 0 }
 0x3bc   :  { %v3386_v48 = vpop.eup %3385 }
 0x3bd   :  { %v841_v51 = vsel %vm214_vm3, %v3386_v48, 0.0  ;;  %v844_v0 = vpack.c.bf16 %v3386_v48, %v3386_v48 }
 0x3be   :  { %269 = vadd.xlane.f32.xlu1 %v268_v49  ;;  %842 = vadd.xlane.f32.xlu0 %v841_v51  ;;  %v3356_v51 = vld [vmem:[#allocation2 + $0x18] sm:$0xff]  }
 0x3bf   :  { %3074 = vmatmul.mubr.msk.bf16.vlgmr.msra.gmra.mrb[16].mxu0 %vm214_vm3, %v605_v50  ;;  %3128 = vmatpush3.bf16.msra.mxu1 %v3356_v51 }
 0x3c0   :  { %v3388_v54 = vpop.eup %3387  ;;  %3084 = vmatpush3.bf16.msra.mxu0 %v740_v52  ;;  %3085 = vmatprep.mubr.msk.bf16.mxu0 %vm3513_vm0, %v3512_v4 }
 0x3c1   :  { %v952_v55 = vsel %vm214_vm3, %v3388_v54, 0.0  ;;  %3095 = vmatprep.subr.bf16.mxu0 %v3512_v4  ;;  %v3390_v57 = vpop.eup %3389  ;;  %v955_v3 = vpack.c.bf16 %v3388_v54, %v3388_v54  ;;  %3141 = vmatprep.subr.bf16.mxu1 %v3512_v4 }
 0x3c2   :  { %953 = vadd.xlane.f32.xlu0 %v952_v55  ;;  %v733_v60 = vpack.c.bf16 %v3390_v57, %v3390_v57  ;;  %v730_v62 = vsel %vm214_vm3, %v3390_v57, 0.0 }
 0x3c4   :  { %v3392_v58 = vpop.eup %3391 }
 0x3c5   :  { %v1063_v59 = vsel %vm214_vm3, %v3392_v58, 0.0  ;;  %v1066_v6 = vpack.c.bf16 %v3392_v58, %v3392_v58 }
 0x3c6   :  { %1064 = vadd.xlane.f32.xlu0 %v1063_v59 }
 0x3c7   :  { %3086 = vmatmul.mubr.msk.bf16.vlgmr.msra.gmra.mrb[20].mxu0 %vm214_vm3, %v733_v60 }
 0x3c8   :  { %3096 = vmatpush3.bf16.msra.mxu0 %v851_v61  ;;  %3097 = vmatprep.mubr.msk.bf16.mxu0 %vm3513_vm0, %v3512_v4 }
 0x3c9   :  { %3107 = vmatprep.subr.bf16.mxu0 %v3512_v4 }
 0x3ca   :  { %731 = vadd.xlane.f32.xlu0 %v730_v62 }
 0x3cf   :  { %3098 = vmatmul.mubr.msk.bf16.vlgmr.msra.gmra.mrb[24].mxu0 %vm214_vm3, %v844_v0 }
 0x3d0   :  { %3108 = vmatpush3.bf16.msra.mxu0 %v962_v1  ;;  %3109 = vmatprep.mubr.msk.bf16.mxu0 %vm3513_vm0, %v3512_v4 }
 0x3d1   :  { %3119 = vmatprep.subr.bf16.mxu0 %v3512_v4 }
 0x3d7   :  { %3110 = vmatmul.mubr.msk.bf16.vlgmr.msra.gmra.mrb[28].mxu0 %vm214_vm3, %v955_v3 }
 0x3d8   :  { %3120 = vmatpush3.bf16.msra.mxu0 %v1073_v5  ;;  %3121 = vmatprep.mubr.msk.bf16.mxu0 %vm3513_vm0, %v3512_v4 }
 0x3d9   :  { %3133 = vmatprep.subr.bf16.mxu0 %v3512_v4 }
 0x3df   :  { %3122 = vmatmul.mubr.msk.bf16.vlgmr.msra.gmra.mrb[32].mxu0 %vm214_vm3, %v1066_v6 }
 0x3e0   :  { %3137 = vmatprep.mubr.msk.bf16.mxu0 %vm3513_vm0, %v3512_v4 }
 0x416   :  { %v382_v20 = vpop.xlane.xlu1 %381 }
 0x417   :  { %3393 = vrcp.f32 %v382_v20 }
 0x421   :  { %v3394_v30 = vpop.eup %3393 }
 0x443   :  { %v493_v26 = vpop.xlane.xlu1 %492 }
 0x447   :  { %v604_v36 = vpop.xlane.xlu1 %603 }
 0x44b   :  { %v843_v22 = vpop.xlane.xlu0 %842  ;;  %v270_v0 = vpop.xlane.xlu1 %269 }
 0x44c   :  { %3395 = vrcp.f32 %v843_v22  ;;  %v2859_v22 = vld [vmem:[#allocation4 + $0x1] ss:$0 sm:$0xff] }
 0x44d   :  { %3397 = vrcp.f32 %v493_v26 }
 0x44f   :  { %v954_v28 = vpop.xlane.xlu0 %953 }
 0x450   :  { %3399 = vrcp.f32 %v954_v28 }
 0x451   :  { %3401 = vrcp.f32 %v604_v36 }
 0x453   :  { %v1065_v39 = vpop.xlane.xlu0 %1064 }
 0x454   :  { %3403 = vrcp.f32 %v1065_v39 }
 0x455   :  { %v3754_v7 = vpop.f32.mrb[4].mxu0  ;;  %3405 = vrcp.f32 %v270_v0 }
 0x456   :  { %v3039_v8 = vpop.f32.mrb[5].mxu0  ;;  %v3396_v31 = vpop.eup %3395 }
 0x457   :  { %v318_v9 = vpop.f32.mrb[6].mxu0  ;;  %v3398_v42 = vpop.eup %3397 }
 0x458   :  { %v3040_v10 = vpop.f32.mrb[7].mxu0  ;;  %v732_v1 = vpop.xlane.xlu0 %731 }
 0x459   :  { %3407 = vrcp.f32 %v732_v1  ;;  %v3361_v1 = vld [vmem:[#allocation2 + $0x40] sm:$0xff]  }
 0x45a   :  { %v3400_v43 = vpop.eup %3399 }
 0x45b   :  { %v3402_v55 = vpop.eup %3401 }
 0x45d   :  { %v426_v11 = vpop.f32.mrb[8].mxu0 }
 0x45e   :  { %v3051_v12 = vpop.f32.mrb[9].mxu0  ;;  %v433_v33 = vmul.f32 %v3394_v30, %v426_v11  ;;  %v3404_v57 = vpop.eup %3403 }
 0x45f   :  { %v429_v13 = vpop.f32.mrb[10].mxu0  ;;  %v3406_v5 = vpop.eup %3405 }
 0x460   :  { %v3052_v14 = vpop.f32.mrb[11].mxu0  ;;  %v322_v12 = vmul.f32 %v3406_v5, %v3754_v7 }
 0x463   :  { %v3408_v9 = vpop.eup %3407 }
 0x48a   :  { %v537_v15 = vpop.f32.mrb[12].mxu0 }
 0x48b   :  { %v3063_v56 = vpop.f32.mrb[13].mxu0  ;;  %v544_v47 = vmul.f32 %v3398_v42, %v537_v15  ;;  %v3357_v42 = vld [vmem:[#allocation2 + $0x20] sm:$0xff]  }
 0x48c   :  { %v540_v16 = vpop.f32.mrb[14].mxu0  ;;  %3134 = vmatpush3.bf16.msra.mxu0 %v3357_v42  ;;  %v2875_v42 = vld [vmem:[#allocation4 + $0x6] ss:$0 sm:$0xff] }
 0x48d   :  { %v3064_v17 = vpop.f32.mrb[15].mxu0  ;;  %3135 = vmatprep.subr.bf16.mxu0 %v3512_v4 }
 0x492   :  { %v648_v18 = vpop.f32.mrb[16].mxu0 }
 0x493   :  { %v3075_v19 = vpop.f32.mrb[17].mxu0  ;;  %v655_v53 = vmul.f32 %v3402_v55, %v648_v18  ;;  %v2863_v55 = vld [vmem:[#allocation4 + $0x2] ss:$0 sm:$0xff] }
 0x494   :  { %v651_v21 = vpop.f32.mrb[18].mxu0 }
 0x495   :  { %v3076_v23 = vpop.f32.mrb[19].mxu0 }
 0x49a   :  { %v3756_v24 = vpop.f32.mrb[20].mxu0 }
 0x49b   :  { %v3087_v25 = vpop.f32.mrb[21].mxu0  ;;  %v783_v13 = vmul.f32 %v3408_v9, %v3756_v24 }
 0x49c   :  { %v779_v27 = vpop.f32.mrb[22].mxu0 }
 0x49d   :  { %v3088_v29 = vpop.f32.mrb[23].mxu0 }
 0x4a2   :  { %v887_v32 = vpop.f32.mrb[24].mxu0 }
 0x4a3   :  { %v894_v34 = vmul.f32 %v3396_v31, %v887_v32  ;;  %v3099_v35 = vpop.f32.mrb[25].mxu0 }
 0x4a4   :  { %v890_v37 = vpop.f32.mrb[26].mxu0 }
 0x4a5   :  { %v3100_v40 = vpop.f32.mrb[27].mxu0  ;;  %v3323_v41 = vpack.i.bf16 %v894_v34, %v433_v33 }
 0x4a7   :  { %3324 = vrot.lane.b32.xlu1 %v3323_v41, %s3510_s9 }
 0x4aa   :  { %v998_v44 = vpop.f32.mrb[28].mxu0 }
 0x4ab   :  { %v1005_v48 = vmul.f32 %v3400_v43, %v998_v44  ;;  %v3111_v49 = vpop.f32.mrb[29].mxu0  ;;  %v3359_v43 = vld [vmem:[#allocation2 + $0x30] sm:$0xff]   ;;  %v3360_v44 = vld [vmem:[#allocation2 + $0x38] sm:$0xff]  }
 0x4ac   :  { %v1001_v50 = vpop.f32.mrb[30].mxu0 }
 0x4ad   :  { %v3328_v52 = vpack.i.bf16 %v1005_v48, %v544_v47  ;;  %v3112_v54 = vpop.f32.mrb[31].mxu0 }
 0x4af   :  { %3329 = vrot.lane.b32.xlu0 %v3328_v52, %s3524_s25 }
 0x4b2   :  { %v1109_v58 = vpop.f32.mrb[32].mxu0 }
 0x4b3   :  { %v1116_v59 = vmul.f32 %v3404_v57, %v1109_v58  ;;  %v3123_v60 = vpop.f32.mrb[33].mxu0 }
 0x4b4   :  { %v1112_v61 = vpop.f32.mrb[34].mxu0  ;;  %v2864_v60 = vld [vmem:[#allocation4 + $0x3] ss:$0 sm:$0xff] }
 0x4b5   :  { %v3333_v62 = vpack.i.bf16 %v1116_v59, %v655_v53  ;;  %v3124_v63 = vpop.f32.mrb[35].mxu0 }
 0x4b7   :  { %3334 = vrot.lane.b32.xlu1 %v3333_v62, %s3525_s26 }
 0x519   :  { %v3325_v2 = vpop.permute.xlu1 %3324 }
 0x51a   :  { %v3327_v6 = vunpack.i.h.bf16 %v3325_v2  ;;  %v3326_v8 = vunpack.i.l.bf16 %v3325_v2  ;;  %v3362_v2 = vld [vmem:[#allocation2 + $0x48] sm:$0xff]  }
 0x51c   :  { %v1129_v15 = vsel %vm214_vm3, %v783_v13, %v3327_v6  ;;  %v668_v56 = vsel %vm214_vm3, %v322_v12, %v3326_v8 }
 0x521   :  { %v3330_v3 = vpop.permute.xlu0 %3329 }
 0x522   :  { %v3332_v10 = vunpack.i.h.bf16 %v3330_v3  ;;  %v3331_v11 = vunpack.i.l.bf16 %v3330_v3  ;;  %v2865_v3 = vld [vmem:[#allocation4 + $0x4] ss:$0 sm:$0xff] }
 0x524   :  { %v1130_v18 = vsel %vm669_vm5, %v1129_v15, %v3332_v10  ;;  %v670_v19 = vsel %vm669_vm5, %v668_v56, %v3331_v11  ;;  %v2869_v15 = vld [vmem:[#allocation4 + $0x5] ss:$0 sm:$0xff] }
 0x529   :  { %v3335_v14 = vpop.permute.xlu1 %3334 }
 0x52a   :  { %v3337_v16 = vunpack.i.h.bf16 %v3335_v14  ;;  %v3336_v17 = vunpack.i.l.bf16 %v3335_v14 }
 0x52c   :  { %v1131_v20 = vsel %vm671_vm6, %v1130_v18, %v3337_v16  ;;  %v672_v21 = vsel %vm671_vm6, %v670_v19, %v3336_v17 }
 0x52d   :  { %v1132_v7 = vpack.c.bf16 %v1131_v20, %v672_v21 }
 0x52f   :  { %3130 = vmatmul.mubr.msk.bf16.vlgmr.msra.gmra.mrb[32].mxu1 %vm165_vm2, %v1132_v7 }
 0x530   :  { %3149 = vmatprep.mubr.msk.bf16.mxu1 %vm3513_vm0, %v3512_v4  ;;  %3142 = vmatpush3.bf16.msra.mxu1 %v3359_v43 }
 0x531   :  { %3143 = vmatprep.subr.bf16.mxu1 %v3512_v4 }
 0x534   :  { %3144 = vmatpush3.bf16.msra.mxu1 %v3360_v44 }
 0x535   :  { %3145 = vmatprep.subr.bf16.mxu1 %v3512_v4 }
 0x538   :  { %3146 = vmatpush3.bf16.msra.mxu1 %v3361_v1 }
 0x539   :  { %3147 = vmatprep.subr.bf16.mxu1 %v3512_v4 }
 0x53c   :  { %3148 = vmatpush3.bf16.msra.mxu1 %v3362_v2 }
 0x53d   :  { %3167 = vmatprep.subr.bf16.mxu1 %v3512_v4 }
 0x602   :  { %v1186_v23 = vpop.f32.mrb[32].mxu1 }
 0x603   :  { %v1187_v24 = vadd.f32 %v2859_v22, %v1186_v23  ;;  %v3131_v25 = vpop.f32.mrb[33].mxu1 }
 0x604   :  { %v1189_v26 = vpop.f32.mrb[34].mxu1 }
 0x605   :  { %v1190_v27 = vadd.f32 %v2859_v22, %v1189_v26  ;;  %v3132_v28 = vpop.f32.mrb[35].mxu1  ;;  %v1193_v29 = vadd.f32 %v1187_v24, %v3587_v45 }
 0x607   :  { %v1195_v30 = vsel %vm165_vm2, %v1193_v29, 0.0  ;;  %v1194_v31 = vadd.f32 %v1190_v27, %v3589_v46  ;;  %v3358_v46 = vld [vmem:[#allocation2 + $0x28] sm:$0xff]  }
 0x608   :  { %1196 = vadd.xlane.f32.xlu1 %v1195_v30  ;;  %3136 = vmatpush3.bf16.msra.mxu0 %v3358_v46 }
 0x609   :  { %v1198_v32 = vsel %vm165_vm2, %v1194_v31, 0.0  ;;  %3153 = vmatprep.subr.bf16.mxu0 %v3512_v4 }
 0x60a   :  { %1199 = vadd.xlane.f32.xlu0 %v1198_v32 }
 0x695   :  { %v1197_v33 = vpop.xlane.xlu1 %1196 }
 0x696   :  { %v1202_v34 = vmul.f32 0.03125, %v1197_v33 }
 0x697   :  { %v1200_v35 = vpop.xlane.xlu0 %1199 }
 0x698   :  { %v1204_v36 = vsub.f32 %v1193_v29, %v1202_v34  ;;  %v1203_v37 = vmul.f32 0.03125, %v1200_v35  ;;  %v3363_v34 = vld [vmem:[#allocation2 + $0x50] sm:$0xff]   ;;  %v3364_v35 = vld [vmem:[#allocation2 + $0x58] sm:$0xff]  }
 0x69a   :  { %v1205_v38 = vsub.f32 %v1194_v31, %v1203_v37  ;;  %v1206_v39 = vmul.f32 %v1204_v36, %v1204_v36 }
 0x69c   :  { %v1208_v40 = vsel %vm165_vm2, %v1206_v39, 0.0  ;;  %v1207_v41 = vmul.f32 %v1205_v38, %v1205_v38 }
 0x69d   :  { %1209 = vadd.xlane.f32.xlu0 %v1208_v40 }
 0x69e   :  { %v1211_v45 = vsel %vm165_vm2, %v1207_v41, 0.0 }
 0x69f   :  { %1212 = vadd.xlane.f32.xlu1 %v1211_v45 }
 0x72a   :  { %v1210_v47 = vpop.xlane.xlu0 %1209 }
 0x72b   :  { %v1214_v48 = vmul.f32 0.03125, %v1210_v47 }
 0x72c   :  { %v1213_v49 = vpop.xlane.xlu1 %1212 }
 0x72d   :  { %v1216_v50 = vadd.f32 1e-05, %v1214_v48  ;;  %v1215_v51 = vmul.f32 0.03125, %v1213_v49  ;;  %v2876_v48 = vld [vmem:[#allocation4 + $0x7] ss:$0 sm:$0xff] }
 0x72f   :  { %3409 = vrsqrt.f32 %v1216_v50  ;;  %v1217_v52 = vadd.f32 1e-05, %v1215_v51 }
 0x731   :  { %3411 = vrsqrt.f32 %v1217_v52 }
 0x739   :  { %v3410_v54 = vpop.eup %3409 }
 0x73a   :  { %v1220_v57 = vmul.f32 %v3410_v54, %v1204_v36  ;;  %v2877_v54 = vld [vmem:[#allocation4 + $0x8] ss:$0 sm:$0xff] }
 0x73b   :  { %v3412_v58 = vpop.eup %3411 }
 0x73c   :  { %v1226_v53 = vmul.f32 %v2863_v55, %v1220_v57  ;;  %v1221_v59 = vmul.f32 %v3412_v58, %v1205_v38 }
 0x73e   :  { %v1227_v61 = vmul.f32 %v2863_v55, %v1221_v59  ;;  %v1232_v62 = vadd.f32 %v2864_v60, %v1226_v53 }
 0x740   :  { %v1233_v63 = vadd.f32 %v2864_v60, %v1227_v61 }
 0x742   :  { %v1234_v0 = vpack.c.bf16 %v1233_v63, %v1232_v62 }
 0x744   :  { %3138 = vmatmul.mubr.msk.bf16.vlgmr.msra.gmra.mrb[36].mxu0 %vm165_vm2, %v1234_v0 }
 0x745   :  { %3157 = vmatprep.mubr.msk.bf16.mxu0 %vm3513_vm0, %v3512_v4  ;;  %3154 = vmatpush3.bf16.msra.mxu0 %v3363_v34 }
 0x746   :  { %3155 = vmatprep.subr.bf16.mxu0 %v3512_v4 }
 0x749   :  { %3156 = vmatpush3.bf16.msra.mxu0 %v3364_v35 }
 0x74a   :  { %3161 = vmatprep.subr.bf16.mxu0 %v3512_v4 }
 0x817   :  { %v1288_v5 = vpop.f32.mrb[36].mxu0 }
 0x818   :  { %v1289_v6 = vadd.f32 %v2865_v3, %v1288_v5  ;;  %v3139_v8 = vpop.f32.mrb[37].mxu0 }
 0x819   :  { %v1291_v9 = vpop.f32.mrb[38].mxu0 }
 0x81a   :  { %v1292_v10 = vadd.f32 %v2865_v3, %v1291_v9  ;;  %v3140_v11 = vpop.f32.mrb[39].mxu0  ;;  %v1295_v12 = vmax.f32 %v1289_v6, 0.0 }
 0x81c   :  { %v1296_v13 = vmax.f32 %v1292_v10, 0.0 }
 0x81e   :  { %v1297_v14 = vpack.c.bf16 %v1296_v13, %v1295_v12 }
 0x820   :  { %3150 = vmatmul.mubr.msk.bf16.vlgmr.msra.gmra.mrb[36].mxu1 %vm1326_vm7, %v1297_v14 }
 0x821   :  { %3169 = vmatprep.mubr.msk.bf16.mxu1 %vm3513_vm0, %v3512_v4 }
 0x8f3   :  { %v1364_v56 = vpop.f32.mrb[36].mxu1 }
 0x8f4   :  { %v1365_v16 = vadd.f32 %v2869_v15, %v1364_v56  ;;  %v3151_v17 = vpop.f32.mrb[37].mxu1 }
 0x8f5   :  { %v1367_v18 = vpop.f32.mrb[38].mxu1 }
 0x8f6   :  { %v1368_v19 = vadd.f32 %v2869_v15, %v1367_v18  ;;  %v3152_v20 = vpop.f32.mrb[39].mxu1  ;;  %v1371_v21 = vadd.f32 %v1365_v16, %v1232_v62 }
 0x8f8   :  { %v1373_v7 = vsel %vm165_vm2, %v1371_v21, 0.0  ;;  %v1372_v22 = vadd.f32 %v1368_v19, %v1233_v63 }
 0x8f9   :  { %1374 = vadd.xlane.f32.xlu0 %v1373_v7 }
 0x8fa   :  { %v1376_v23 = vsel %vm165_vm2, %v1372_v22, 0.0 }
 0x8fb   :  { %1377 = vadd.xlane.f32.xlu1 %v1376_v23 }
 0x986   :  { %v1375_v24 = vpop.xlane.xlu0 %1374 }
 0x987   :  { %v1379_v25 = vmul.f32 0.03125, %v1375_v24 }
 0x988   :  { %v1378_v26 = vpop.xlane.xlu1 %1377 }
 0x989   :  { %v1381_v27 = vsub.f32 %v1371_v21, %v1379_v25  ;;  %v1380_v28 = vmul.f32 0.03125, %v1378_v26 }
 0x98b   :  { %v1382_v29 = vsub.f32 %v1372_v22, %v1380_v28  ;;  %v1383_v30 = vmul.f32 %v1381_v27, %v1381_v27 }
 0x98d   :  { %v1385_v31 = vsel %vm165_vm2, %v1383_v30, 0.0  ;;  %v1384_v32 = vmul.f32 %v1382_v29, %v1382_v29 }
 0x98e   :  { %1386 = vadd.xlane.f32.xlu0 %v1385_v31 }
 0x98f   :  { %v1388_v33 = vsel %vm165_vm2, %v1384_v32, 0.0 }
 0x990   :  { %1389 = vadd.xlane.f32.xlu1 %v1388_v33 }
 0xa1b   :  { %v1387_v36 = vpop.xlane.xlu0 %1386 }
 0xa1c   :  { %v1391_v37 = vmul.f32 0.03125, %v1387_v36 }
 0xa1d   :  { %v1390_v38 = vpop.xlane.xlu1 %1389 }
 0xa1e   :  { %v1393_v39 = vadd.f32 1e-05, %v1391_v37  ;;  %v1392_v40 = vmul.f32 0.03125, %v1390_v38 }
 0xa20   :  { %3413 = vrsqrt.f32 %v1393_v39  ;;  %v1394_v41 = vadd.f32 1e-05, %v1392_v40 }
 0xa22   :  { %3415 = vrsqrt.f32 %v1394_v41 }
 0xa2a   :  { %v3414_v45 = vpop.eup %3413 }
 0xa2b   :  { %v1397_v46 = vmul.f32 %v3414_v45, %v1381_v27 }
 0xa2c   :  { %v3416_v43 = vpop.eup %3415 }
 0xa2d   :  { %v1403_v44 = vmul.f32 %v2875_v42, %v1397_v46  ;;  %v1398_v47 = vmul.f32 %v3416_v43, %v1382_v29 }
 0xa2f   :  { %v1404_v49 = vmul.f32 %v2875_v42, %v1398_v47  ;;  %v3798_v50 = vadd.f32 %v2876_v48, %v1403_v44 }
 0xa31   :  { %v3800_v51 = vadd.f32 %v2876_v48, %v1404_v49 }
 0xa33   :  { %v1439_v52 = vpack.c.bf16 %v3800_v51, %v3798_v50 }
 0xa35   :  { %3158 = vmatmul.mubr.msk.bf16.vlgmr.msra.gmra.mrb[40].mxu0 %vm165_vm2, %v1439_v52 }
 0xa36   :  { %3163 = vmatprep.mubr.msk.bf16.mxu0 %vm3513_vm0, %v3512_v4 }
 0xb08   :  { %v1493_v55 = vpop.f32.mrb[40].mxu0 }
 0xb09   :  { %v1494_v57 = vadd.f32 %v2877_v54, %v1493_v55  ;;  %v3159_v58 = vpop.f32.mrb[41].mxu0 }
 0xb0a   :  { %v1496_v53 = vpop.f32.mrb[42].mxu0 }
 0xb0b   :  { %v3807_v59 = vpack.c.bf16 %v1494_v57, %v1494_v57  ;;  %v3160_v60 = vpop.f32.mrb[43].mxu0  ;;  %v1497_v61 = vadd.f32 %v2877_v54, %v1496_v53 }
 0xb0d   :  { %1613 = vrot.lane.b32.xlu1 %v3807_v59, %s3517_s17  ;;  %1502 = vrot.lane.b32.xlu0 %v3807_v59, %s3515_s2  ;;  %v3821_v62 = vpack.c.bf16 %v1497_v61, %v1497_v61 }
 0xb11   :  { %1611 = vrot.lane.b32.xlu1 %v3807_v59, %s3514_s0  ;;  %1724 = vrot.lane.b32.xlu0 %v3807_v59, %s3519_s19 }
 0xb15   :  { %1722 = vrot.lane.b32.xlu1 %v3807_v59, %s3516_s16  ;;  %1835 = vrot.lane.b32.xlu0 %v3807_v59, %s3520_s20 }
 0xb19   :  { %1833 = vrot.lane.b32.xlu1 %v3807_v59, %s3518_s18  ;;  %1961 = vrot.lane.b32.xlu0 %v3821_v62, %s3515_s2 }
 0xb1d   :  { %2072 = vrot.lane.b32.xlu1 %v3821_v62, %s3517_s17  ;;  %2070 = vrot.lane.b32.xlu0 %v3821_v62, %s3514_s0 }
 0xb21   :  { %2183 = vrot.lane.b32.xlu1 %v3821_v62, %s3519_s19  ;;  %2181 = vrot.lane.b32.xlu0 %v3821_v62, %s3516_s16 }
 0xb25   :  { %2294 = vrot.lane.b32.xlu1 %v3821_v62, %s3520_s20  ;;  %2292 = vrot.lane.b32.xlu0 %v3821_v62, %s3518_s18 }
 0xb29   :  { %1672 = vrot.lane.b32.xlu1 %v3807_v59, %s3521_s21  ;;  %1561 = vrot.lane.b32.xlu0 %v3807_v59, %s3506_s22 }
 0xb7f   :  { %v1503_v63 = vpop.permute.xlu0 %1502  ;;  %v1614_v2 = vpop.permute.xlu1 %1613 }
 0xb80   :  { %v1508_v0 = vsel %vm214_vm3, %v1503_v63, 0  ;;  %v1619_v5 = vsel %vm214_vm3, %v1614_v2, 0 }
 0xb81   :  { %3162 = vmatpush3.bf16.xpose.msra.mxu0 %v1508_v0 }
 0xb82   :  { %3173 = vmatprep.subr.bf16.mxu0 %v3512_v4 }
 0xb83   :  { %v1725_v1 = vpop.permute.xlu0 %1724  ;;  %v1612_v8 = vpop.permute.xlu1 %1611 }
 0xb84   :  { %v1730_v10 = vsel %vm214_vm3, %v1725_v1, 0 }
 0xb87   :  { %v1836_v3 = vpop.permute.xlu0 %1835  ;;  %v1723_v12 = vpop.permute.xlu1 %1722 }
 0xb88   :  { %3164 = vmatmul.mubr.msk.bf16.vlgmr.msra.gmra.mrb[44].mxu0 %vm214_vm3, %v3807_v59  ;;  %v1841_v14 = vsel %vm214_vm3, %v1836_v3, 0 }
 0xb89   :  { %3174 = vmatpush3.bf16.xpose.msra.mxu0 %v1619_v5  ;;  %3175 = vmatprep.mubr.msk.bf16.mxu0 %vm3513_vm0, %v3512_v4 }
 0xb8a   :  { %3185 = vmatprep.subr.bf16.mxu0 %v3512_v4 }
 0xb8b   :  { %v1962_v6 = vpop.permute.xlu0 %1961  ;;  %v1834_v16 = vpop.permute.xlu1 %1833 }
 0xb8c   :  { %v1967_v17 = vsel %vm214_vm3, %v1962_v6, 0 }
 0xb8f   :  { %v2071_v9 = vpop.permute.xlu0 %2070  ;;  %v2073_v18 = vpop.permute.xlu1 %2072 }
 0xb90   :  { %3176 = vmatmul.mubr.msk.bf16.vlgmr.msra.gmra.mrb[48].mxu0 %vm214_vm3, %v1612_v8  ;;  %v2078_v19 = vsel %vm214_vm3, %v2073_v18, 0 }
 0xb91   :  { %3186 = vmatpush3.bf16.xpose.msra.mxu0 %v1730_v10  ;;  %3187 = vmatprep.mubr.msk.bf16.mxu0 %vm3513_vm0, %v3512_v4 }
 0xb92   :  { %3197 = vmatprep.subr.bf16.mxu0 %v3512_v4 }
 0xb93   :  { %v2182_v11 = vpop.permute.xlu0 %2181  ;;  %v2184_v20 = vpop.permute.xlu1 %2183 }
 0xb94   :  { %v2189_v21 = vsel %vm214_vm3, %v2184_v20, 0 }
 0xb97   :  { %v2293_v13 = vpop.permute.xlu0 %2292  ;;  %v2295_v7 = vpop.permute.xlu1 %2294 }
 0xb98   :  { %3188 = vmatmul.mubr.msk.bf16.vlgmr.msra.gmra.mrb[52].mxu0 %vm214_vm3, %v1723_v12  ;;  %v2300_v22 = vsel %vm214_vm3, %v2295_v7, 0 }
 0xb99   :  { %3198 = vmatpush3.bf16.xpose.msra.mxu0 %v1841_v14  ;;  %3199 = vmatprep.mubr.msk.bf16.mxu0 %vm3513_vm0, %v3512_v4 }
 0xb9a   :  { %3209 = vmatprep.subr.bf16.mxu0 %v3512_v4 }
 0xb9b   :  { %v1562_v15 = vpop.permute.xlu0 %1561 }
 0xb9c   :  { %v1567_v56 = vsel %vm277_vm4, %v1562_v15, 0 }
 0xb9d   :  { %3168 = vmatpush3.bf16.msra.mxu1 %v1567_v56 }
 0xb9e   :  { %3179 = vmatprep.subr.bf16.mxu1 %v3512_v4 }
 0xba0   :  { %3200 = vmatmul.mubr.msk.bf16.vlgmr.msra.gmra.mrb[56].mxu0 %vm214_vm3, %v1834_v16 }
 0xba1   :  { %3210 = vmatpush3.bf16.xpose.msra.mxu0 %v1967_v17  ;;  %3211 = vmatprep.mubr.msk.bf16.mxu0 %vm3513_vm0, %v3512_v4 }
 0xba2   :  { %3221 = vmatprep.subr.bf16.mxu0 %v3512_v4 }
 0xba8   :  { %3212 = vmatmul.mubr.msk.bf16.vlgmr.msra.gmra.mrb[60].mxu0 %vm214_vm3, %v3821_v62 }
 0xba9   :  { %3222 = vmatpush3.bf16.xpose.msra.mxu0 %v2078_v19  ;;  %3223 = vmatprep.mubr.msk.bf16.mxu0 %vm3513_vm0, %v3512_v4 }
 0xbaa   :  { %3233 = vmatprep.subr.bf16.mxu0 %v3512_v4 }
 0xbb0   :  { %3224 = vmatmul.mubr.msk.bf16.vlgmr.msra.gmra.mrb[64].mxu0 %vm214_vm3, %v2071_v9 }
 0xbb1   :  { %3234 = vmatpush3.bf16.xpose.msra.mxu0 %v2189_v21  ;;  %3235 = vmatprep.mubr.msk.bf16.mxu0 %vm3513_vm0, %v3512_v4 }
 0xbb2   :  { %3245 = vmatprep.subr.bf16.mxu0 %v3512_v4 }
 0xbb8   :  { %3236 = vmatmul.mubr.msk.bf16.vlgmr.msra.gmra.mrb[68].mxu0 %vm214_vm3, %v2182_v11 }
 0xbb9   :  { %3246 = vmatpush3.bf16.xpose.msra.mxu0 %v2300_v22  ;;  %3247 = vmatprep.mubr.msk.bf16.mxu0 %vm3513_vm0, %v3512_v4 }
 0xbba   :  { %3257 = vmatprep.subr.bf16.mxu0 %v3512_v4 }
 0xbc0   :  { %3248 = vmatmul.mubr.msk.bf16.vlgmr.msra.gmra.mrb[72].mxu0 %vm214_vm3, %v2293_v13  ;;  %v1673_v13 = vpop.permute.xlu1 %1672 }
 0xbc1   :  { %3261 = vmatprep.mubr.msk.bf16.mxu0 %vm3513_vm0, %v3512_v4  ;;  %v1678_v22 = vsel %vm277_vm4, %v1673_v13, 0 }
 0xc5b   :  { %v1544_v23 = vpop.f32.mrb[44].mxu0 }
 0xc5c   :  { %v3887_v24 = vmul.f32 0.35355338, %v1544_v23  ;;  %v3165_v25 = vpop.f32.mrb[45].mxu0 }
 0xc5d   :  { %v1547_v26 = vpop.f32.mrb[46].mxu0 }
 0xc5e   :  { %v3166_v27 = vpop.f32.mrb[47].mxu0  ;;  %v1551_v28 = vsel %vm214_vm3, %v3887_v24, -inf }
 0xc5f   :  { %1552 = vmax.xlane.f32.xlu1 %v1551_v28 }
 0xc63   :  { %v1655_v29 = vpop.f32.mrb[48].mxu0 }
 0xc64   :  { %v1661_v30 = vmul.f32 0.35355338, %v1655_v29  ;;  %v3177_v31 = vpop.f32.mrb[49].mxu0 }
 0xc65   :  { %v1658_v32 = vpop.f32.mrb[50].mxu0 }
 0xc66   :  { %v3178_v33 = vpop.f32.mrb[51].mxu0  ;;  %v1662_v34 = vsel %vm214_vm3, %v1661_v30, -inf }
 0xc67   :  { %1663 = vmax.xlane.f32.xlu0 %v1662_v34 }
 0xc6b   :  { %v1766_v35 = vpop.f32.mrb[52].mxu0 }
 0xc6c   :  { %v1772_v36 = vmul.f32 0.35355338, %v1766_v35  ;;  %v3189_v37 = vpop.f32.mrb[53].mxu0 }
 0xc6d   :  { %v1769_v38 = vpop.f32.mrb[54].mxu0 }
 0xc6e   :  { %v3190_v39 = vpop.f32.mrb[55].mxu0  ;;  %v1773_v40 = vsel %vm214_vm3, %v1772_v36, -inf }
 0xc6f   :  { %1774 = vmax.xlane.f32.xlu0 %v1773_v40 }
 0xc70   :  { %1783 = vrot.lane.b32.xlu1 %v3807_v59, %s3522_s23 }
 0xc73   :  { %v1877_v41 = vpop.f32.mrb[56].mxu0 }
 0xc74   :  { %v3201_v45 = vpop.f32.mrb[57].mxu0  ;;  %v3897_v61 = vmul.f32 0.35355338, %v1877_v41 }
 0xc75   :  { %v1880_v42 = vpop.f32.mrb[58].mxu0 }
 0xc76   :  { %v3202_v46 = vpop.f32.mrb[59].mxu0  ;;  %v1884_v1 = vsel %vm214_vm3, %v3897_v61, -inf }
 0xc7b   :  { %v2003_v43 = vpop.f32.mrb[60].mxu0 }
 0xc7c   :  { %v3213_v44 = vpop.f32.mrb[61].mxu0  ;;  %v3899_v63 = vmul.f32 0.35355338, %v2003_v43 }
 0xc7d   :  { %v2006_v47 = vpop.f32.mrb[62].mxu0 }
 0xc7e   :  { %v3214_v48 = vpop.f32.mrb[63].mxu0 }
 0xc83   :  { %v2114_v49 = vpop.f32.mrb[64].mxu0 }
 0xc84   :  { %v3225_v52 = vpop.f32.mrb[65].mxu0  ;;  %v3911_v10 = vmul.f32 0.35355338, %v2114_v49 }
 0xc85   :  { %1894 = vrot.lane.b32.xlu0 %v3807_v59, %s3523_s24  ;;  %v2117_v54 = vpop.f32.mrb[66].mxu0  ;;  %v2010_v59 = vsel %vm214_vm3, %v3899_v63, -inf }
 0xc86   :  { %v3226_v55 = vpop.f32.mrb[67].mxu0  ;;  %v2121_v12 = vsel %vm214_vm3, %v3911_v10, -inf }
 0xc8b   :  { %v2225_v57 = vpop.f32.mrb[68].mxu0 }
 0xc8c   :  { %v3237_v58 = vpop.f32.mrb[69].mxu0  ;;  %v3903_v6 = vmul.f32 0.35355338, %v2225_v57 }
 0xc8d   :  { %v2228_v53 = vpop.f32.mrb[70].mxu0 }
 0xc8e   :  { %v3238_v60 = vpop.f32.mrb[71].mxu0  ;;  %v2232_v9 = vsel %vm214_vm3, %v3903_v6, -inf }
 0xc93   :  { %v2336_v0 = vpop.f32.mrb[72].mxu0 }
 0xc94   :  { %1885 = vmax.xlane.f32.xlu1 %v1884_v1  ;;  %v3249_v2 = vpop.f32.mrb[73].mxu0  ;;  %v3907_v8 = vmul.f32 0.35355338, %v2336_v0 }
 0xc95   :  { %v2339_v3 = vpop.f32.mrb[74].mxu0 }
 0xc96   :  { %v3250_v5 = vpop.f32.mrb[75].mxu0  ;;  %v2343_v11 = vsel %vm214_vm3, %v3907_v8, -inf }
 0xc98   :  { %2011 = vmax.xlane.f32.xlu1 %v2010_v59 }
 0xc9c   :  { %2233 = vmax.xlane.f32.xlu1 %v2232_v9 }
 0xca0   :  { %2344 = vmax.xlane.f32.xlu1 %v2343_v11 }
 0xca4   :  { %2122 = vmax.xlane.f32.xlu0 %v2121_v12 }
 0xcb1   :  { %2020 = vrot.lane.b32.xlu1 %v3821_v62, %s3506_s22 }
 0xcba   :  { %2131 = vrot.lane.b32.xlu0 %v3821_v62, %s3521_s21 }
 0xcbe   :  { %2242 = vrot.lane.b32.xlu0 %v3821_v62, %s3522_s23 }
 0xcc2   :  { %2353 = vrot.lane.b32.xlu0 %v3821_v62, %s3523_s24 }
 0xcec   :  { %v1553_v14 = vpop.xlane.xlu1 %1552 }
 0xced   :  { %v1554_v15 = vsub.f32 %v3887_v24, %v1553_v14 }
 0xcef   :  { %v1555_v56 = vmul.f32 1.442695, %v1554_v15 }
 0xcf0   :  { %v1784_v24 = vpop.permute.xlu1 %1783 }
 0xcf1   :  { %3417 = vpow2.f32 %v1555_v56  ;;  %v1789_v27 = vsel %vm277_vm4, %v1784_v24, 0 }
 0xcf4   :  { %v1664_v16 = vpop.xlane.xlu0 %1663 }
 0xcf5   :  { %v1665_v17 = vsub.f32 %v1661_v30, %v1664_v16 }
 0xcf7   :  { %v1666_v18 = vmul.f32 1.442695, %v1665_v17 }
 0xcf9   :  { %3419 = vpow2.f32 %v1666_v18 }
 0xcfb   :  { %v3926_v19 = vpop.eup %3417 }
 0xcfc   :  { %v1775_v20 = vpop.xlane.xlu0 %1774  ;;  %v1560_v21 = vpack.c.bf16 %v3926_v19, %v3926_v19 }
 0xcfd   :  { %v1776_v7 = vsub.f32 %v1772_v36, %v1775_v20 }
 0xcfe   :  { %3170 = vmatmul.mubr.msk.bf16.vlgmr.msra.gmra.mrb[40].mxu1 %vm214_vm3, %v1560_v21 }
 0xcff   :  { %v1777_v62 = vmul.f32 1.442695, %v1776_v7  ;;  %3180 = vmatpush3.bf16.msra.mxu1 %v1678_v22  ;;  %3181 = vmatprep.mubr.msk.bf16.mxu1 %vm3513_vm0, %v3512_v4 }
 0xd00   :  { %3191 = vmatprep.subr.bf16.mxu1 %v3512_v4  ;;  %v1895_v29 = vpop.permute.xlu0 %1894 }
 0xd01   :  { %3421 = vpow2.f32 %v1777_v62  ;;  %v1900_v32 = vsel %vm277_vm4, %v1895_v29, 0 }
 0xd03   :  { %v3420_v23 = vpop.eup %3419 }
 0xd04   :  { %v1668_v25 = vsel %vm214_vm3, %v3420_v23, 0.0  ;;  %v1671_v26 = vpack.c.bf16 %v3420_v23, %v3420_v23 }
 0xd05   :  { %1669 = vadd.xlane.f32.xlu1 %v1668_v25 }
 0xd06   :  { %3182 = vmatmul.mubr.msk.bf16.vlgmr.msra.gmra.mrb[44].mxu1 %vm214_vm3, %v1671_v26 }
 0xd07   :  { %3192 = vmatpush3.bf16.msra.mxu1 %v1789_v27  ;;  %3193 = vmatprep.mubr.msk.bf16.mxu1 %vm3513_vm0, %v3512_v4 }
 0xd08   :  { %3203 = vmatprep.subr.bf16.mxu1 %v3512_v4 }
 0xd0b   :  { %v3422_v28 = vpop.eup %3421 }
 0xd0c   :  { %v1779_v30 = vsel %vm214_vm3, %v3422_v28, 0.0  ;;  %v1782_v31 = vpack.c.bf16 %v3422_v28, %v3422_v28 }
 0xd0d   :  { %1780 = vadd.xlane.f32.xlu0 %v1779_v30 }
 0xd0e   :  { %3194 = vmatmul.mubr.msk.bf16.vlgmr.msra.gmra.mrb[48].mxu1 %vm214_vm3, %v1782_v31 }
 0xd0f   :  { %3204 = vmatpush3.bf16.msra.mxu1 %v1900_v32  ;;  %3205 = vmatprep.mubr.msk.bf16.mxu1 %vm3513_vm0, %v3512_v4 }
 0xd10   :  { %3215 = vmatprep.subr.bf16.mxu1 %v3512_v4 }
 0xd21   :  { %v1886_v33 = vpop.xlane.xlu1 %1885 }
 0xd22   :  { %v1887_v34 = vsub.f32 %v3897_v61, %v1886_v33 }
 0xd24   :  { %v1888_v35 = vmul.f32 1.442695, %v1887_v34 }
 0xd25   :  { %v2012_v36 = vpop.xlane.xlu1 %2011 }
 0xd26   :  { %3423 = vpow2.f32 %v1888_v35  ;;  %v2013_v37 = vsub.f32 %v3899_v63, %v2012_v36 }
 0xd28   :  { %v2014_v38 = vmul.f32 1.442695, %v2013_v37 }
 0xd29   :  { %v2234_v39 = vpop.xlane.xlu1 %2233 }
 0xd2a   :  { %v2235_v40 = vsub.f32 %v3903_v6, %v2234_v39  ;;  %3425 = vpow2.f32 %v2014_v38 }
 0xd2c   :  { %v2236_v41 = vmul.f32 1.442695, %v2235_v40 }
 0xd2d   :  { %v2345_v45 = vpop.xlane.xlu1 %2344 }
 0xd2e   :  { %3427 = vpow2.f32 %v2236_v41  ;;  %v2346_v42 = vsub.f32 %v3907_v8, %v2345_v45 }
 0xd30   :  { %v3424_v46 = vpop.eup %3423  ;;  %v2347_v43 = vmul.f32 1.442695, %v2346_v42  ;;  %v3365_v42 = vld [vmem:[#allocation2 + $0x60] sm:$0xff]  }
 0xd31   :  { %v2123_v44 = vpop.xlane.xlu0 %2122  ;;  %v2021_v47 = vpop.permute.xlu1 %2020  ;;  %v1893_v48 = vpack.c.bf16 %v3424_v46, %v3424_v46  ;;  %v1890_v8 = vsel %vm214_vm3, %v3424_v46, 0.0  ;;  %3258 = vmatpush3.bf16.msra.mxu0 %v3365_v42 }
 0xd32   :  { %3429 = vpow2.f32 %v2347_v43  ;;  %v2124_v49 = vsub.f32 %v3911_v10, %v2123_v44  ;;  %v2026_v52 = vsel %vm277_vm4, %v2021_v47, 0  ;;  %v1557_v10 = vsel %vm214_vm3, %v3926_v19, 0.0  ;;  %3259 = vmatprep.subr.bf16.mxu0 %v3512_v4 }
 0xd33   :  { %3206 = vmatmul.mubr.msk.bf16.vlgmr.msra.gmra.mrb[52].mxu1 %vm214_vm3, %v1893_v48 }
 0xd34   :  { %v2125_v54 = vmul.f32 1.442695, %v2124_v49  ;;  %3216 = vmatpush3.bf16.msra.mxu1 %v2026_v52  ;;  %3217 = vmatprep.mubr.msk.bf16.mxu1 %vm3513_vm0, %v3512_v4  ;;  %v3426_v55 = vpop.eup %3425 }
 0xd35   :  { %3227 = vmatprep.subr.bf16.mxu1 %v3512_v4  ;;  %v2132_v58 = vpop.permute.xlu0 %2131  ;;  %v2019_v60 = vpack.c.bf16 %v3426_v55, %v3426_v55  ;;  %v2016_v5 = vsel %vm214_vm3, %v3426_v55, 0.0 }
 0xd36   :  { %3431 = vpow2.f32 %v2125_v54  ;;  %v2137_v61 = vsel %vm277_vm4, %v2132_v58, 0  ;;  %v3366_v58 = vld [vmem:[#allocation2 + $0x68] sm:$0xff]  }
 0xd37   :  { %3260 = vmatpush3.bf16.msra.mxu0 %v3366_v58 }
 0xd38   :  { %v3428_v57 = vpop.eup %3427  ;;  %3273 = vmatprep.subr.bf16.mxu0 %v3512_v4 }
 0xd39   :  { %v2238_v53 = vsel %vm214_vm3, %v3428_v57, 0.0  ;;  %v2243_v2 = vpop.permute.xlu0 %2242  ;;  %v2241_v11 = vpack.c.bf16 %v3428_v57, %v3428_v57 }
 0xd3a   :  { %2239 = vadd.xlane.f32.xlu1 %v2238_v53  ;;  %v2248_v59 = vsel %vm277_vm4, %v2243_v2, 0 }
 0xd3b   :  { %3218 = vmatmul.mubr.msk.bf16.vlgmr.msra.gmra.mrb[56].mxu1 %vm214_vm3, %v2019_v60 }
 0xd3c   :  { %v3430_v63 = vpop.eup %3429  ;;  %3228 = vmatpush3.bf16.msra.mxu1 %v2137_v61  ;;  %3229 = vmatprep.mubr.msk.bf16.mxu1 %vm3513_vm0, %v3512_v4 }
 0xd3d   :  { %v2349_v0 = vsel %vm214_vm3, %v3430_v63, 0.0  ;;  %3239 = vmatprep.subr.bf16.mxu1 %v3512_v4  ;;  %v2354_v9 = vpop.permute.xlu0 %2353  ;;  %v2352_v13 = vpack.c.bf16 %v3430_v63, %v3430_v63 }
 0xd3e   :  { %2350 = vadd.xlane.f32.xlu1 %v2349_v0  ;;  %v2359_v12 = vsel %vm277_vm4, %v2354_v9, 0 }
 0xd40   :  { %v3432_v1 = vpop.eup %3431 }
 0xd41   :  { %v2127_v3 = vsel %vm214_vm3, %v3432_v1, 0.0  ;;  %v2130_v6 = vpack.c.bf16 %v3432_v1, %v3432_v1 }
 0xd42   :  { %2128 = vadd.xlane.f32.xlu0 %v2127_v3  ;;  %2017 = vadd.xlane.f32.xlu1 %v2016_v5 }
 0xd43   :  { %3230 = vmatmul.mubr.msk.bf16.vlgmr.msra.gmra.mrb[60].mxu1 %vm214_vm3, %v2130_v6 }
 0xd44   :  { %3240 = vmatpush3.bf16.msra.mxu1 %v2248_v59  ;;  %3241 = vmatprep.mubr.msk.bf16.mxu1 %vm3513_vm0, %v3512_v4 }
 0xd45   :  { %3251 = vmatprep.subr.bf16.mxu1 %v3512_v4 }
 0xd46   :  { %1891 = vadd.xlane.f32.xlu0 %v1890_v8 }
 0xd4a   :  { %1558 = vadd.xlane.f32.xlu0 %v1557_v10 }
 0xd4b   :  { %3242 = vmatmul.mubr.msk.bf16.vlgmr.msra.gmra.mrb[64].mxu1 %vm214_vm3, %v2241_v11 }
 0xd4c   :  { %3252 = vmatpush3.bf16.msra.mxu1 %v2359_v12  ;;  %3253 = vmatprep.mubr.msk.bf16.mxu1 %vm3513_vm0, %v3512_v4 }
 0xd4d   :  { %3265 = vmatprep.subr.bf16.mxu1 %v3512_v4 }
 0xd53   :  { %3254 = vmatmul.mubr.msk.bf16.vlgmr.msra.gmra.mrb[68].mxu1 %vm214_vm3, %v2352_v13 }
 0xd54   :  { %3269 = vmatprep.mubr.msk.bf16.mxu1 %vm3513_vm0, %v3512_v4 }
 0xd92   :  { %v1670_v26 = vpop.xlane.xlu1 %1669 }
 0xd93   :  { %3433 = vrcp.f32 %v1670_v26 }
 0xd9a   :  { %v1781_v23 = vpop.xlane.xlu0 %1780 }
 0xd9d   :  { %v3434_v35 = vpop.eup %3433 }
 0xdc7   :  { %v2240_v33 = vpop.xlane.xlu1 %2239 }
 0xdcb   :  { %v2351_v41 = vpop.xlane.xlu1 %2350 }
 0xdcf   :  { %v2129_v28 = vpop.xlane.xlu0 %2128  ;;  %v2018_v9 = vpop.xlane.xlu1 %2017 }
 0xdd0   :  { %3435 = vrcp.f32 %v2129_v28 }
 0xdd1   :  { %v3982_v14 = vpop.f32.mrb[40].mxu1  ;;  %3437 = vrcp.f32 %v1781_v23 }
 0xdd2   :  { %v3171_v15 = vpop.f32.mrb[41].mxu1  ;;  %3439 = vrcp.f32 %v2240_v33 }
 0xdd3   :  { %v1606_v56 = vpop.f32.mrb[42].mxu1  ;;  %v1892_v46 = vpop.xlane.xlu0 %1891  ;;  %3441 = vrcp.f32 %v2351_v41 }
 0xdd4   :  { %v3172_v16 = vpop.f32.mrb[43].mxu1  ;;  %3443 = vrcp.f32 %v1892_v46 }
 0xdd7   :  { %v1559_v8 = vpop.xlane.xlu0 %1558 }
 0xdd8   :  { %3445 = vrcp.f32 %v1559_v8 }
 0xdd9   :  { %v1714_v17 = vpop.f32.mrb[44].mxu1  ;;  %3447 = vrcp.f32 %v2018_v9  ;;  %v3371_v9 = vld [vmem:[#allocation2 + $0x90] sm:$0xff]  }
 0xdda   :  { %v3183_v18 = vpop.f32.mrb[45].mxu1  ;;  %v3436_v36 = vpop.eup %3435  ;;  %v1721_v38 = vmul.f32 %v3434_v35, %v1714_v17 }
 0xddb   :  { %v1717_v19 = vpop.f32.mrb[46].mxu1  ;;  %v3438_v47 = vpop.eup %3437 }
 0xddc   :  { %v3184_v20 = vpop.f32.mrb[47].mxu1  ;;  %v3440_v48 = vpop.eup %3439 }
 0xddd   :  { %v3442_v61 = vpop.eup %3441 }
 0xdde   :  { %v3444_v63 = vpop.eup %3443 }
 0xde1   :  { %v1825_v21 = vpop.f32.mrb[48].mxu1 }
 0xde2   :  { %v3195_v7 = vpop.f32.mrb[49].mxu1  ;;  %v1832_v52 = vmul.f32 %v3438_v47, %v1825_v21  ;;  %v3446_v12 = vpop.eup %3445  ;;  %v3367_v47 = vld [vmem:[#allocation2 + $0x70] sm:$0xff]  }
 0xde3   :  { %v1828_v22 = vpop.f32.mrb[50].mxu1  ;;  %v3448_v56 = vpop.eup %3447  ;;  %v1610_v19 = vmul.f32 %v3446_v12, %v3982_v14  ;;  %v2897_v14 = vld [vmem:[#allocation4 + $0x9] ss:$0 sm:$0xff]  ;;  %3266 = vmatpush3.bf16.msra.mxu1 %v3367_v47 }
 0xde4   :  { %v3196_v62 = vpop.f32.mrb[51].mxu1  ;;  %3267 = vmatprep.subr.bf16.mxu1 %v3512_v4 }
 0xe06   :  { %v1936_v24 = vpop.f32.mrb[52].mxu1 }
 0xe07   :  { %v3207_v25 = vpop.f32.mrb[53].mxu1  ;;  %v1943_v1 = vmul.f32 %v3444_v63, %v1936_v24  ;;  %v2901_v63 = vld [vmem:[#allocation4 + $0xa] ss:$0 sm:$0xff] }
 0xe08   :  { %v1939_v27 = vpop.f32.mrb[54].mxu1 }
 0xe09   :  { %v3208_v29 = vpop.f32.mrb[55].mxu1 }
 0xe0e   :  { %v2062_v30 = vpop.f32.mrb[56].mxu1 }
 0xe0f   :  { %v3219_v31 = vpop.f32.mrb[57].mxu1  ;;  %v2069_v18 = vmul.f32 %v3448_v56, %v2062_v30 }
 0xe10   :  { %v2065_v32 = vpop.f32.mrb[58].mxu1 }
 0xe11   :  { %v3220_v34 = vpop.f32.mrb[59].mxu1 }
 0xe16   :  { %v2173_v37 = vpop.f32.mrb[60].mxu1 }
 0xe17   :  { %v2180_v39 = vmul.f32 %v3436_v36, %v2173_v37  ;;  %v3231_v40 = vpop.f32.mrb[61].mxu1 }
 0xe18   :  { %v2176_v45 = vpop.f32.mrb[62].mxu1 }
 0xe19   :  { %v3232_v43 = vpop.f32.mrb[63].mxu1  ;;  %v3338_v44 = vpack.i.bf16 %v2180_v39, %v1721_v38 }
 0xe1b   :  { %3339 = vrot.lane.b32.xlu0 %v3338_v44, %s3510_s9 }
 0xe1e   :  { %v2284_v49 = vpop.f32.mrb[64].mxu1 }
 0xe1f   :  { %v2291_v54 = vmul.f32 %v3440_v48, %v2284_v49  ;;  %v3243_v55 = vpop.f32.mrb[65].mxu1  ;;  %v3369_v48 = vld [vmem:[#allocation2 + $0x80] sm:$0xff]   ;;  %v3370_v49 = vld [vmem:[#allocation2 + $0x88] sm:$0xff]  }
 0xe20   :  { %v2287_v57 = vpop.f32.mrb[66].mxu1 }
 0xe21   :  { %v3343_v53 = vpack.i.bf16 %v2291_v54, %v1832_v52  ;;  %v3244_v60 = vpop.f32.mrb[67].mxu1 }
 0xe23   :  { %3344 = vrot.lane.b32.xlu1 %v3343_v53, %s3524_s25 }
 0xe26   :  { %v2395_v0 = vpop.f32.mrb[68].mxu1 }
 0xe27   :  { %v2402_v2 = vmul.f32 %v3442_v61, %v2395_v0  ;;  %v3255_v3 = vpop.f32.mrb[69].mxu1 }
 0xe28   :  { %v2398_v5 = vpop.f32.mrb[70].mxu1  ;;  %v2902_v3 = vld [vmem:[#allocation4 + $0xb] ss:$0 sm:$0xff] }
 0xe29   :  { %v3348_v6 = vpack.i.bf16 %v2402_v2, %v1943_v1  ;;  %v3256_v59 = vpop.f32.mrb[71].mxu1 }
 0xe2b   :  { %3349 = vrot.lane.b32.xlu1 %v3348_v6, %s3525_s26 }
 0xe8d   :  { %v3340_v10 = vpop.permute.xlu0 %3339 }
 0xe8e   :  { %v3342_v13 = vunpack.i.h.bf16 %v3340_v10  ;;  %v3341_v15 = vunpack.i.l.bf16 %v3340_v10  ;;  %v3372_v10 = vld [vmem:[#allocation2 + $0x98] sm:$0xff]  }
 0xe90   :  { %v1956_v21 = vsel %vm214_vm3, %v1610_v19, %v3341_v15  ;;  %v2415_v7 = vsel %vm214_vm3, %v2069_v18, %v3342_v13 }
 0xe95   :  { %v3345_v11 = vpop.permute.xlu1 %3344 }
 0xe96   :  { %v3347_v16 = vunpack.i.h.bf16 %v3345_v11  ;;  %v3346_v17 = vunpack.i.l.bf16 %v3345_v11  ;;  %v2903_v11 = vld [vmem:[#allocation4 + $0xc] ss:$0 sm:$0xff] }
 0xe98   :  { %v2416_v23 = vsel %vm669_vm5, %v2415_v7, %v3347_v16  ;;  %v1957_v24 = vsel %vm669_vm5, %v1956_v21, %v3346_v17  ;;  %v2907_v21 = vld [vmem:[#allocation4 + $0xd] ss:$0 sm:$0xff] }
 0xe9d   :  { %v3350_v20 = vpop.permute.xlu1 %3349 }
 0xe9e   :  { %v3352_v22 = vunpack.i.h.bf16 %v3350_v20  ;;  %v3351_v62 = vunpack.i.l.bf16 %v3350_v20 }
 0xea0   :  { %v1958_v25 = vsel %vm671_vm6, %v1957_v24, %v3351_v62  ;;  %v2417_v26 = vsel %vm671_vm6, %v2416_v23, %v3352_v22 }
 0xea1   :  { %v2418_v27 = vpack.c.bf16 %v2417_v26, %v1958_v25 }
 0xea3   :  { %3262 = vmatmul.mubr.msk.bf16.vlgmr.msra.gmra.mrb[76].mxu0 %vm165_vm2, %v2418_v27 }
 0xea4   :  { %3281 = vmatprep.mubr.msk.bf16.mxu0 %vm3513_vm0, %v3512_v4  ;;  %3274 = vmatpush3.bf16.msra.mxu0 %v3369_v48  ;;  %v2913_v48 = vld [vmem:[#allocation4 + $0xe] ss:$0 sm:$0xff] }
 0xea5   :  { %3275 = vmatprep.subr.bf16.mxu0 %v3512_v4 }
 0xea8   :  { %3276 = vmatpush3.bf16.msra.mxu0 %v3370_v49 }
 0xea9   :  { %3277 = vmatprep.subr.bf16.mxu0 %v3512_v4 }
 0xeac   :  { %3278 = vmatpush3.bf16.msra.mxu0 %v3371_v9 }
 0xead   :  { %3279 = vmatprep.subr.bf16.mxu0 %v3512_v4 }
 0xeb0   :  { %3280 = vmatpush3.bf16.msra.mxu0 %v3372_v10  ;;  %v2919_v10 = vld [vmem:[#allocation4 + $0x11] ss:$0 sm:$0xff] }
 0xf76   :  { %v2472_v28 = vpop.f32.mrb[76].mxu0 }
 0xf77   :  { %v2473_v29 = vadd.f32 %v2897_v14, %v2472_v28  ;;  %v3263_v30 = vpop.f32.mrb[77].mxu0 }
 0xf78   :  { %v2475_v31 = vpop.f32.mrb[78].mxu0 }
 0xf79   :  { %v2476_v32 = vadd.f32 %v2897_v14, %v2475_v31  ;;  %v3264_v33 = vpop.f32.mrb[79].mxu0  ;;  %v2479_v34 = vadd.f32 %v2473_v29, %v3798_v50 }
 0xf7b   :  { %v2481_v35 = vsel %vm165_vm2, %v2479_v34, 0.0  ;;  %v2480_v36 = vadd.f32 %v2476_v32, %v3800_v51  ;;  %v3368_v51 = vld [vmem:[#allocation2 + $0x78] sm:$0xff]  }
 0xf7c   :  { %2482 = vadd.xlane.f32.xlu0 %v2481_v35  ;;  %3268 = vmatpush3.bf16.msra.mxu1 %v3368_v51 }
 0xf7d   :  { %v2484_v37 = vsel %vm165_vm2, %v2480_v36, 0.0  ;;  %3285 = vmatprep.subr.bf16.mxu1 %v3512_v4 }
 0xf7e   :  { %2485 = vadd.xlane.f32.xlu1 %v2484_v37 }
0x1009   :  { %v2483_v38 = vpop.xlane.xlu0 %2482 }
0x100a   :  { %v2487_v39 = vmul.f32 0.03125, %v2483_v38 }
0x100b   :  { %v2486_v40 = vpop.xlane.xlu1 %2485 }
0x100c   :  { %v2489_v41 = vsub.f32 %v2479_v34, %v2487_v39  ;;  %v2488_v45 = vmul.f32 0.03125, %v2486_v40  ;;  %v3373_v39 = vld [vmem:[#allocation2 + $0xa0] sm:$0xff]   ;;  %v3374_v40 = vld [vmem:[#allocation2 + $0xa8] sm:$0xff]  }
0x100e   :  { %v2490_v42 = vsub.f32 %v2480_v36, %v2488_v45  ;;  %v2491_v46 = vmul.f32 %v2489_v41, %v2489_v41 }
0x1010   :  { %v2493_v43 = vsel %vm165_vm2, %v2491_v46, 0.0  ;;  %v2492_v44 = vmul.f32 %v2490_v42, %v2490_v42 }
0x1011   :  { %2494 = vadd.xlane.f32.xlu0 %v2493_v43 }
0x1012   :  { %v2496_v50 = vsel %vm165_vm2, %v2492_v44, 0.0 }
0x1015   :  { %2497 = vadd.xlane.f32.xlu0 %v2496_v50 }
0x109e   :  { %v2495_v52 = vpop.xlane.xlu0 %2494 }
0x109f   :  { %v2499_v54 = vmul.f32 0.03125, %v2495_v52 }
0x10a1   :  { %v2501_v55 = vadd.f32 1e-05, %v2499_v54 }
0x10a2   :  { %v2498_v57 = vpop.xlane.xlu0 %2497 }
0x10a3   :  { %3449 = vrsqrt.f32 %v2501_v55  ;;  %v2500_v58 = vmul.f32 0.03125, %v2498_v57  ;;  %v2914_v55 = vld [vmem:[#allocation4 + $0xf] ss:$0 sm:$0xff] }
0x10a5   :  { %v2502_v53 = vadd.f32 1e-05, %v2500_v58 }
0x10a7   :  { %3451 = vrsqrt.f32 %v2502_v53 }
0x10ad   :  { %v3450_v60 = vpop.eup %3449 }
0x10ae   :  { %v2505_v61 = vmul.f32 %v3450_v60, %v2489_v41 }
0x10b0   :  { %v2511_v1 = vmul.f32 %v2901_v63, %v2505_v61 }
0x10b1   :  { %v3452_v0 = vpop.eup %3451 }
0x10b2   :  { %v2506_v2 = vmul.f32 %v3452_v0, %v2490_v42  ;;  %v2517_v6 = vadd.f32 %v2902_v3, %v2511_v1  ;;  %v3376_v0 = vld [vmem:[#allocation2 + $0xb8] sm:$0xff]   ;;  %v2915_v1 = vld [vmem:[#allocation4 + $0x10] ss:$0 sm:$0xff] }
0x10b4   :  { %v2512_v5 = vmul.f32 %v2901_v63, %v2506_v2  ;;  %v3375_v63 = vld [vmem:[#allocation2 + $0xb0] sm:$0xff]  }
0x10b6   :  { %v2518_v59 = vadd.f32 %v2902_v3, %v2512_v5 }
0x10b8   :  { %v2519_v8 = vpack.c.bf16 %v2518_v59, %v2517_v6 }
0x10ba   :  { %3270 = vmatmul.mubr.msk.bf16.vlgmr.msra.gmra.mrb[72].mxu1 %vm165_vm2, %v2519_v8 }
0x10bb   :  { %3289 = vmatprep.mubr.msk.bf16.mxu1 %vm3513_vm0, %v3512_v4  ;;  %3286 = vmatpush3.bf16.msra.mxu1 %v3373_v39 }
0x10bc   :  { %3287 = vmatprep.subr.bf16.mxu1 %v3512_v4 }
0x10bf   :  { %3288 = vmatpush3.bf16.msra.mxu1 %v3374_v40 }
0x10c0   :  { %3293 = vmatprep.subr.bf16.mxu1 %v3512_v4 }
0x118d   :  { %v2573_v12 = vpop.f32.mrb[72].mxu1 }
0x118e   :  { %v2574_v13 = vadd.f32 %v2903_v11, %v2573_v12  ;;  %v3271_v15 = vpop.f32.mrb[73].mxu1 }
0x118f   :  { %v2576_v56 = vpop.f32.mrb[74].mxu1 }
0x1190   :  { %v2577_v16 = vadd.f32 %v2903_v11, %v2576_v56  ;;  %v3272_v17 = vpop.f32.mrb[75].mxu1  ;;  %v2580_v18 = vmax.f32 %v2574_v13, 0.0 }
0x1192   :  { %v2581_v19 = vmax.f32 %v2577_v16, 0.0 }
0x1194   :  { %v2582_v20 = vpack.c.bf16 %v2581_v19, %v2580_v18 }
0x1196   :  { %3282 = vmatmul.mubr.msk.bf16.vlgmr.msra.gmra.mrb[80].mxu0 %vm1326_vm7, %v2582_v20 }
0x1269   :  { %v2648_v7 = vpop.f32.mrb[80].mxu0 }
0x126a   :  { %v2649_v22 = vadd.f32 %v2907_v21, %v2648_v7  ;;  %v3283_v62 = vpop.f32.mrb[81].mxu0 }
0x126b   :  { %v2651_v23 = vpop.f32.mrb[82].mxu0 }
0x126c   :  { %v2655_v24 = vadd.f32 %v2649_v22, %v2517_v6  ;;  %v2652_v25 = vadd.f32 %v2907_v21, %v2651_v23  ;;  %v3284_v26 = vpop.f32.mrb[83].mxu0 }
0x126e   :  { %v2657_v27 = vsel %vm165_vm2, %v2655_v24, 0.0  ;;  %v2656_v14 = vadd.f32 %v2652_v25, %v2518_v59 }
0x126f   :  { %2658 = vadd.xlane.f32.xlu0 %v2657_v27 }
0x1270   :  { %v2660_v28 = vsel %vm165_vm2, %v2656_v14, 0.0 }
0x1271   :  { %2661 = vadd.xlane.f32.xlu1 %v2660_v28 }
0x12fc   :  { %v2659_v29 = vpop.xlane.xlu0 %2658 }
0x12fd   :  { %v2663_v30 = vmul.f32 0.03125, %v2659_v29 }
0x12fe   :  { %v2662_v31 = vpop.xlane.xlu1 %2661 }
0x12ff   :  { %v2665_v32 = vsub.f32 %v2655_v24, %v2663_v30  ;;  %v2664_v33 = vmul.f32 0.03125, %v2662_v31 }
0x1301   :  { %v2666_v34 = vsub.f32 %v2656_v14, %v2664_v33  ;;  %v2667_v35 = vmul.f32 %v2665_v32, %v2665_v32 }
0x1303   :  { %v2669_v36 = vsel %vm165_vm2, %v2667_v35, 0.0  ;;  %v2668_v37 = vmul.f32 %v2666_v34, %v2666_v34 }
0x1304   :  { %2670 = vadd.xlane.f32.xlu0 %v2669_v36 }
0x1305   :  { %v2672_v38 = vsel %vm165_vm2, %v2668_v37, 0.0 }
0x1306   :  { %2673 = vadd.xlane.f32.xlu1 %v2672_v38 }
0x1391   :  { %v2671_v41 = vpop.xlane.xlu0 %2670 }
0x1392   :  { %v2675_v45 = vmul.f32 0.03125, %v2671_v41 }
0x1393   :  { %v2674_v42 = vpop.xlane.xlu1 %2673 }
0x1394   :  { %v2677_v46 = vadd.f32 1e-05, %v2675_v45  ;;  %v2676_v43 = vmul.f32 0.03125, %v2674_v42 }
0x1396   :  { %3453 = vrsqrt.f32 %v2677_v46  ;;  %v2678_v44 = vadd.f32 1e-05, %v2676_v43 }
0x1398   :  { %3455 = vrsqrt.f32 %v2678_v44 }
0x13a0   :  { %v3454_v50 = vpop.eup %3453 }
0x13a1   :  { %v2681_v47 = vmul.f32 %v3454_v50, %v2665_v32 }
0x13a2   :  { %v3456_v51 = vpop.eup %3455 }
0x13a3   :  { %v2682_v49 = vmul.f32 %v3456_v51, %v2666_v34  ;;  %v2687_v52 = vmul.f32 %v2913_v48, %v2681_v47 }
0x13a5   :  { %v2688_v54 = vmul.f32 %v2913_v48, %v2682_v49  ;;  %v2693_v58 = vadd.f32 %v2914_v55, %v2687_v52 }
0x13a7   :  { %v2694_v57 = vadd.f32 %v2914_v55, %v2688_v54 }
0x13a9   :  { %v2706_v53 = vrot.slane %v2694_v57, 7 }
0x13ab   :  { %v2709_v60 = vsel %vm2708_vm8, %v2693_v58, %v2706_v53 }
0x13ac   :  { %v2710_v61 = vpack.c.bf16 %v2709_v60, %v2709_v60 }
0x13ae   :  { %3290 = vmatmul.mubr.msk.bf16.vlgmr.msra.gmra.mrb[76].mxu1 %vm165_vm2, %v2710_v61 }
0x13af   :  { %3297 = vmatprep.mubr.msk.bf16.mxu1 %vm3513_vm0, %v3512_v4  ;;  %3294 = vmatpush3.bf16.msra.mxu1 %v3375_v63 }
0x13b0   :  { %3295 = vmatprep.subr.bf16.mxu1 %v3512_v4 }
0x13b3   :  { %3296 = vmatpush3.bf16.msra.mxu1 %v3376_v0 }
0x1481   :  { %v2764_v2 = vpop.f32.mrb[76].mxu1 }
0x1482   :  { %v2765_v3 = vadd.f32 %v2915_v1, %v2764_v2  ;;  %v3291_v5 = vpop.f32.mrb[77].mxu1 }
0x1483   :  { %v2767_v6 = vpop.f32.mrb[78].mxu1 }
0x1484   :  { %v2770_v59 = vmax.f32 %v2765_v3, 0.0  ;;  %v3292_v8 = vpop.f32.mrb[79].mxu1 }
0x1486   :  { %v2771_v9 = vpack.c.bf16 %v2770_v59, %v2770_v59 }
0x1488   :  { %3298 = vmatmul.mubr.msk.bf16.vlgmr.msra.gmra.mrb[80].mxu1 %vm165_vm2, %v2771_v9 }
0x155b   :  { %v2825_v11 = vpop.f32.mrb[80].mxu1 }
0x155c   :  { %v2826_v12 = vadd.f32 %v2919_v10, %v2825_v11  ;;  %v3299_v13 = vpop.f32.mrb[81].mxu1 }
0x155d   :  { %v2828_v15 = vpop.f32.mrb[82].mxu1 }
0x155e   :  { %2832 = vst.msk [vmem:[%s4031_s3] sm:$0x3] %vm2831_vm9, %v2826_v12  ;;  %v3300_v4 = vpop.f32.mrb[83].mxu1 }
0x155f   :  { %2837 = vsyncpa [#allocation3], 1 }
0x1560   :  { %2838 = vsyncpa [#allocation5], 1 }

</bundles_post_ra>
